<compile_context>
chip_gen: v7x
topology: tpu7x:2x2x1
jax: 0.10.0
libtpu: 0.0.40
codegen_flags: <defaults>
</compile_context>

<pallas_src>
import math
import functools

import jax
import jax.numpy as jnp
from jax.experimental import pallas as pl
from jax.experimental.pallas import tpu as pltpu

LN_EPS = 1e-5
OPERATION_ORDER = ("self_attn", "norm", "cross_attn", "norm", "ffn", "norm")
VMEM_LIMIT_BYTES = 48 * 1024 * 1024   # explicit budget (fits v7x 64 MiB physical with headroom)


def _round_up(x, m):
    return ((x + m - 1) // m) * m


def _ln_epilogue(x_f32, gamma, beta):
    """LayerNorm on f32 values (biased variance, like torch.nn.LayerNorm)."""
    mu = jnp.mean(x_f32, axis=-1, keepdims=True)
    xc = x_f32 - mu
    var = jnp.mean(xc * xc, axis=-1, keepdims=True)
    return xc * jax.lax.rsqrt(var + LN_EPS) * gamma + beta


# ----------------------------------------------------------------------------
# Fused attention block kernel:
#   out = [LN]( identity + MHA(query [+ qpos], key [+ kpos], value) @ Wo + bo )
# Grid = (batch, q-tile); all heads handled with batched (leading-head-axis) einsums.
# ----------------------------------------------------------------------------
def _fused_attn_kernel(*refs, num_heads, self_fused, has_qpos, has_kpos,
                       separate_identity, fuse_ln, want_map):
    it = iter(refs)
    q_ref = next(it)
    k_ref = v_ref = None
    if not self_fused:
        k_ref = next(it)
        v_ref = next(it)
    qpos_ref = next(it) if has_qpos else None
    kpos_ref = next(it) if has_kpos else None
    ident_ref = next(it) if separate_identity else None
    win_ref = next(it)    # (D, 3D)   [Wq*scale | Wk | Wv]   (compute dtype)
    bin_ref = next(it)    # (1, 3D)   [bq*scale | bk | bv]   (f32)
    wo_ref = next(it)     # (H, Dh, D) per-head output projection slabs (compute dtype)
    bo_ref = next(it)     # (1, D)    (f32)
    if fuse_ln:
        g_ref = next(it)
        beta_ref = next(it)
    o_ref = next(it)
    map_ref = next(it) if want_map else None

    cd = win_ref.dtype                      # MXU operand dtype (bf16 or f32)
    H = num_heads
    D = o_ref.shape[-1]
    Dh = D // H

    x_q = q_ref[0].astype(jnp.float32)                       # (TQ, D)
    residual = ident_ref[0].astype(jnp.float32) if separate_identity else x_q
    q_in = x_q + qpos_ref[0].astype(jnp.float32) if has_qpos else x_q

    w_in = win_ref[...]                                       # (D, 3D)
    b_in = bin_ref[...]                                       # (1, 3D)

    # ---- fused input projections (wide MXU matmuls, f32 accumulation). ----
    # 1/sqrt(Dh) is already folded into the Q columns of w_in / b_in (prepare_params).
    if self_fused:
        # self-attention with a single q-tile: k_in == q_in, value source is the raw query.
        qk = jnp.dot(q_in.astype(cd), w_in[:, :2 * D],
                     preferred_element_type=jnp.float32) + b_in[:, :2 * D]
        v = jnp.dot(x_q.astype(cd), w_in[:, 2 * D:],
                    preferred_element_type=jnp.float32) + b_in[:, 2 * D:]
        q = qk[:, :D]
        k = qk[:, D:]
    else:
        x_k = k_ref[0].astype(jnp.float32)
        x_v = v_ref[0].astype(jnp.float32)
        k_in = x_k + kpos_ref[0].astype(jnp.float32) if has_kpos else x_k
        q = jnp.dot(q_in.astype(cd), w_in[:, :D],
                    preferred_element_type=jnp.float32) + b_in[:, :D]
        k = jnp.dot(k_in.astype(cd), w_in[:, D:2 * D],
                    preferred_element_type=jnp.float32) + b_in[:, D:2 * D]
        v = jnp.dot(x_v.astype(cd), w_in[:, 2 * D:],
                    preferred_element_type=jnp.float32) + b_in[:, 2 * D:]

    # ---- head split: static lane slices stacked along a NEW leading (major) axis. ----
    # (No lane-axis concatenation of outputs; all attention math below is head-batched.)
    # TODO(synk): when Dh is a multiple of 128 this becomes a free reshape (q.reshape(L,H,Dh)).
    qh = jnp.stack([q[:, h * Dh:(h + 1) * Dh] for h in range(H)], axis=0).astype(cd)  # (H,TQ,Dh)
    kh = jnp.stack([k[:, h * Dh:(h + 1) * Dh] for h in range(H)], axis=0).astype(cd)  # (H,Lk,Dh)
    vh = jnp.stack([v[:, h * Dh:(h + 1) * Dh] for h in range(H)], axis=0).astype(cd)  # (H,Lk,Dh)

    # ---- head-batched attention (single dot_generals with a leading batch dim). ----
    s = jnp.einsum('hqd,hkd->hqk', qh, kh, preferred_element_type=jnp.float32)        # (H,TQ,Lk)
    s = s - jnp.max(s, axis=-1, keepdims=True)
    p = jnp.exp(s)
    p = p * pl.reciprocal(jnp.sum(p, axis=-1, keepdims=True), approx=True)            # softmax

    pv = jnp.einsum('hqk,hkd->hqd', p.astype(cd), vh,
                    preferred_element_type=jnp.float32)                               # (H,TQ,Dh)

    # ---- output projection: per-head weight slabs, heads merged by a leading-axis sum. ----
    out_h = jnp.einsum('hqd,hde->hqe', pv.astype(cd), wo_ref[...],
                       preferred_element_type=jnp.float32)                            # (H,TQ,D)
    out = jnp.sum(out_h, axis=0) + bo_ref[...] + residual
    if fuse_ln:
        out = _ln_epilogue(out, g_ref[...], beta_ref[...])
    o_ref[0] = out.astype(o_ref.dtype)
    if want_map:
        map_ref[0] = jnp.mean(p, axis=0).astype(map_ref.dtype)


def fused_attention_block(query, key, value, identity, query_pos, key_pos, p, ln, *,
                          num_heads, want_map, self_attn, out_dtype, map_dtype):
    """Whole attention sub-layer (pos add + fused QKV proj + batched-head MHA + out proj +
    residual [+ fused LayerNorm])."""
    B, Lq, D = query.shape

    # Row tiling over the query length (second parallel grid axis).  K/V stay whole per step.
    if Lq > 128:
        TQ = 128
        Lqp = _round_up(Lq, TQ)
    else:
        TQ, Lqp = Lq, Lq
    nq = Lqp // TQ
    self_fused = self_attn and nq == 1     # q_in == k_in only when the q tile covers the whole seq

    def pad_q(t):
        if t is None or Lqp == Lq:
            return t
        return jnp.pad(t, ((0, 0), (0, Lqp - Lq), (0, 0)))

    qp = pad_q(query)
    qpp = pad_q(query_pos)
    identp = pad_q(identity)

    if self_attn:
        k_t, v_t, kp_t = query, query, query_pos
    else:
        k_t = key if key is not None else query
        v_t = value if value is not None else k_t
        kp_t = key_pos
    Lk = k_t.shape[1]

    has_qpos = query_pos is not None
    has_kpos = (kp_t is not None) and not self_fused
    sep_ident = identity is not None
    fuse_ln = ln is not None

    q_spec = pl.BlockSpec((1, TQ, D), lambda b, qi: (b, qi, 0))
    kv_spec = pl.BlockSpec((1, Lk, D), lambda b, qi: (b, 0, 0))
    const2 = lambda shape: pl.BlockSpec(shape, lambda b, qi: (0, 0))

    args, specs = [qp], [q_spec]
    if not self_fused:
        args += [k_t, v_t]
        specs += [kv_spec, kv_spec]
    if has_qpos:
        args.append(qpp); specs.append(q_spec)
    if has_kpos:
        args.append(kp_t); specs.append(kv_spec)
    if sep_ident:
        args.append(identp); specs.append(q_spec)
    args += [p["w_in"], p["b_in"], p["wo"], p["bo"]]
    specs += [const2((D, 3 * D)), const2((1, 3 * D)),
              pl.BlockSpec((num_heads, D // num_heads, D), lambda b, qi: (0, 0, 0)),
              const2((1, D))]
    if fuse_ln:
        g, beta = ln
        args += [g, beta]
        specs += [const2((1, D)), const2((1, D))]

    out_shapes = [jax.ShapeDtypeStruct((B, Lqp, D), out_dtype)]
    out_specs = [pl.BlockSpec((1, TQ, D), lambda b, qi: (b, qi, 0))]
    if want_map:
        out_shapes.append(jax.ShapeDtypeStruct((B, Lqp, Lk), map_dtype))
        out_specs.append(pl.BlockSpec((1, TQ, Lk), lambda b, qi: (b, qi, 0)))

    kernel = functools.partial(
        _fused_attn_kernel, num_heads=num_heads, self_fused=self_fused,
        has_qpos=has_qpos, has_kpos=has_kpos, separate_identity=sep_ident,
        fuse_ln=fuse_ln, want_map=want_map)

    res = pl.pallas_call(
        kernel,
        out_shape=tuple(out_shapes) if want_map else out_shapes[0],
        grid=(B, nq),
        in_specs=specs,
        out_specs=tuple(out_specs) if want_map else out_specs[0],
        compiler_params=pltpu.CompilerParams(
            dimension_semantics=("parallel", "parallel"),
            vmem_limit_bytes=VMEM_LIMIT_BYTES),
    )(*args)

    if want_map:
        out, amap = res
        if Lqp != Lq:
            out, amap = out[:, :Lq], amap[:, :Lq]
        return out, amap
    out = res
    if Lqp != Lq:
        out = out[:, :Lq]
    return out


# ----------------------------------------------------------------------------
# Fused FFN block kernel:  out = [LN]( identity + relu(x @ W1 + b1) @ W2 + b2 )
# Tiled over rows (M = B*L), grid axis marked "parallel".
# ----------------------------------------------------------------------------
def _fused_ffn_kernel(*refs, fuse_ln, separate_identity):
    it = iter(refs)
    x_ref = next(it)
    ident_ref = next(it) if separate_identity else None
    w1_ref = next(it); b1_ref = next(it)
    w2_ref = next(it); b2_ref = next(it)
    if fuse_ln:
        g_ref = next(it); beta_ref = next(it)
    o_ref = next(it)

    cd = w1_ref.dtype
    x = x_ref[...].astype(jnp.float32)
    h = jnp.dot(x.astype(cd), w1_ref[...], preferred_element_type=jnp.float32) + b1_ref[...]
    h = jnp.maximum(h, 0.0)
    y = jnp.dot(h.astype(cd), w2_ref[...], preferred_element_type=jnp.float32) + b2_ref[...]
    residual = ident_ref[...].astype(jnp.float32) if separate_identity else x
    y = y + residual
    if fuse_ln:
        y = _ln_epilogue(y, g_ref[...], beta_ref[...])
    o_ref[...] = y.astype(o_ref.dtype)


def fused_ffn_block(x, identity, p, ln, *, out_dtype):
    B, L, D = x.shape
    Dffn = p["w1"].shape[1]
    M = B * L
    sep_ident = identity is not None
    fuse_ln = ln is not None

    # 512-row tiles (v6e sweet spot; re-check on v7x 64 MiB), 16-row granularity so bf16
    # activation blocks stay sublane-aligned.
    TM = 512 if M >= 512 else _round_up(M, 16)
    Mp = _round_up(M, TM)

    x2 = x.reshape(M, D)
    ident2 = identity.reshape(M, D) if sep_ident else None
    if Mp != M:
        x2 = jnp.pad(x2, ((0, Mp - M), (0, 0)))
        if sep_ident:
            ident2 = jnp.pad(ident2, ((0, Mp - M), (0, 0)))

    row_spec = pl.BlockSpec((TM, D), lambda i: (i, 0))
    args, specs = [x2], [row_spec]
    if sep_ident:
        args.append(ident2); specs.append(row_spec)
    args += [p["w1"], p["b1"], p["w2"], p["b2"]]
    specs += [pl.BlockSpec((D, Dffn), lambda i: (0, 0)),
              pl.BlockSpec((1, Dffn), lambda i: (0, 0)),
              pl.BlockSpec((Dffn, D), lambda i: (0, 0)),
              pl.BlockSpec((1, D), lambda i: (0, 0))]
    if fuse_ln:
        g, beta = ln
        args += [g, beta]
        specs += [pl.BlockSpec((1, D), lambda i: (0, 0)),
                  pl.BlockSpec((1, D), lambda i: (0, 0))]

    kernel = functools.partial(_fused_ffn_kernel, fuse_ln=fuse_ln, separate_identity=sep_ident)
    out = pl.pallas_call(
        kernel,
        out_shape=jax.ShapeDtypeStruct((Mp, D), out_dtype),
        grid=(Mp // TM,),
        in_specs=specs,
        out_specs=pl.BlockSpec((TM, D), lambda i: (i, 0)),
        compiler_params=pltpu.CompilerParams(
            dimension_semantics=("parallel",),
            vmem_limit_bytes=VMEM_LIMIT_BYTES),
    )(*args)
    if Mp != M:
        out = out[:M]
    return out.reshape(B, L, D)


# ----------------------------------------------------------------------------
# Standalone LayerNorm (only used when a 'norm' cannot be fused into the
# preceding attn/ffn kernel, e.g. pre-norm operation orders).
# ----------------------------------------------------------------------------
def _layernorm_kernel(x_ref, g_ref, b_ref, o_ref):
    x = x_ref[...].astype(jnp.float32)
    o_ref[...] = _ln_epilogue(x, g_ref[...], b_ref[...]).astype(o_ref.dtype)


def layer_norm(x, gamma, beta, *, out_dtype):
    B, L, D = x.shape
    M = B * L
    TM = 512 if M >= 512 else _round_up(M, 16)
    Mp = _round_up(M, TM)
    x2 = x.reshape(M, D)
    if Mp != M:
        x2 = jnp.pad(x2, ((0, Mp - M), (0, 0)))
    out = pl.pallas_call(
        _layernorm_kernel,
        out_shape=jax.ShapeDtypeStruct((Mp, D), out_dtype),
        grid=(Mp // TM,),
        in_specs=[pl.BlockSpec((TM, D), lambda i: (i, 0)),
                  pl.BlockSpec((1, D), lambda i: (0, 0)),
                  pl.BlockSpec((1, D), lambda i: (0, 0))],
        out_specs=pl.BlockSpec((TM, D), lambda i: (i, 0)),
        compiler_params=pltpu.CompilerParams(
            dimension_semantics=("parallel",),
            vmem_limit_bytes=VMEM_LIMIT_BYTES),
    )(x2, gamma, beta)
    if Mp != M:
        out = out[:M]
    return out.reshape(B, L, D)


# ----------------------------------------------------------------------------
# BaseTransformerLayer forward
# ----------------------------------------------------------------------------
def base_transformer_layer_forward(params, query, key=None, value=None,
                                   query_pos=None, key_pos=None,
                                   operation_order=OPERATION_ORDER, num_heads=4):
    # TODO(synk): attn_masks / key_padding_mask support (masks are None for this config).
    ops = list(operation_order)
    pre_norm = ops[0] == "norm"
    final_dtype = query.dtype
    ref_w = params["attn"][0]["w_in"] if params["attn"] else params["ffn"][0]["w1"]
    # inter-kernel activations (and the cross-attn map) use the compute dtype; final output
    # keeps the caller's dtype.
    act_dtype = jnp.float32 if ref_w.dtype == jnp.float32 else jnp.bfloat16

    norm_i = attn_i = ffn_i = 0
    identity = query
    attn_map = None
    i = 0
    while i < len(ops):
        layer = ops[i]
        nxt_is_norm = (i + 1 < len(ops)) and ops[i + 1] == "norm" and not pre_norm
        fused_step = 2 if (layer != "norm" and nxt_is_norm) else 1
        is_last = (i + fused_step) >= len(ops)
        out_dtype = final_dtype if is_last else act_dtype

        if layer in ("self_attn", "cross_attn"):
            p = params["attn"][attn_i]
            ln = params["norm"][norm_i] if nxt_is_norm else None
            ident = identity if pre_norm else None
            if layer == "self_attn":
                query = fused_attention_block(
                    query, None, None, ident, query_pos, None, p, ln,
                    num_heads=num_heads, want_map=False, self_attn=True,
                    out_dtype=out_dtype, map_dtype=act_dtype)
            else:
                query, attn_map = fused_attention_block(
                    query, key, value, ident, query_pos, key_pos, p, ln,
                    num_heads=num_heads, want_map=True, self_attn=False,
                    out_dtype=out_dtype, map_dtype=act_dtype)
            identity = query
            attn_i += 1
            if nxt_is_norm:
                norm_i += 1
            i += fused_step
        elif layer == "ffn":
            ln = params["norm"][norm_i] if nxt_is_norm else None
            ident = identity if pre_norm else None
            query = fused_ffn_block(query, ident, params["ffn"][ffn_i], ln, out_dtype=out_dtype)
            ffn_i += 1
            if nxt_is_norm:
                norm_i += 1
            i += fused_step
        elif layer == "norm":
            g, b = params["norm"][norm_i]
            query = layer_norm(query, g, b, out_dtype=out_dtype)
            norm_i += 1
            i += 1
        else:
            raise ValueError(f"unknown op {layer}")
    return query, attn_map


# ----------------------------------------------------------------------------
# One-time host-side parameter repack: fuse + pre-scale + pre-cast weights.
# (Review item: no per-call astype / reshape of weights inside the jitted forward.)
# ----------------------------------------------------------------------------
def prepare_params(raw, num_heads, compute_dtype=jnp.bfloat16):
    cd = compute_dtype
    out = {"attn": [], "ffn": [], "norm": []}
    for p in raw["attn"]:
        D = p["wq"].shape[0]
        Dh = D // num_heads
        scale = 1.0 / math.sqrt(Dh)
        # fused input projection [Wq*scale | Wk | Wv] (1/sqrt(Dh) folded into Q)
        w_in = jnp.concatenate([p["wq"] * scale, p["wk"], p["wv"]], axis=1).astype(cd)
        b_in = jnp.concatenate([p["bq"] * scale, p["bk"], p["bv"]]).reshape(1, 3 * D)
        # output projection split per head: (H, Dh, D), merged in-kernel by a leading-axis sum
        wo = p["wo"].reshape(num_heads, Dh, D).astype(cd)
        out["attn"].append(dict(w_in=w_in, b_in=b_in.astype(jnp.float32),
                                wo=wo, bo=p["bo"].reshape(1, D).astype(jnp.float32)))
    for p in raw["ffn"]:
        D, Dffn = p["w1"].shape
        out["ffn"].append(dict(
            w1=p["w1"].astype(cd), b1=p["b1"].reshape(1, Dffn).astype(jnp.float32),
            w2=p["w2"].astype(cd), b2=p["b2"].reshape(1, D).astype(jnp.float32)))
    for g, b in raw["norm"]:
        D = g.shape[0]
        out["norm"].append((g.reshape(1, D).astype(jnp.float32),
                            b.reshape(1, D).astype(jnp.float32)))
    return out


# ----------------------------------------------------------------------------
# Deterministic raw parameter init (xavier-uniform weights, zero biases)
# ----------------------------------------------------------------------------
def _dense(key, fan_in, fan_out):
    limit = math.sqrt(6.0 / (fan_in + fan_out))
    w = jax.random.uniform(key, (fan_in, fan_out), jnp.float32, -limit, limit)
    b = jnp.zeros((fan_out,), jnp.float32)
    return w, b


def init_params(key, embed_dim, num_heads, ffn_dim, num_attn=2, num_ffn=1, num_norm=3):
    params = {"attn": [], "ffn": [], "norm": []}
    for _ in range(num_attn):
        key, k1, k2, k3, k4 = jax.random.split(key, 5)
        wq, bq = _dense(k1, embed_dim, embed_dim)
        wk, bk = _dense(k2, embed_dim, embed_dim)
        wv, bv = _dense(k3, embed_dim, embed_dim)
        wo, bo = _dense(k4, embed_dim, embed_dim)
        params["attn"].append(dict(wq=wq, bq=bq, wk=wk, bk=bk, wv=wv, bv=bv, wo=wo, bo=bo))
    for _ in range(num_ffn):
        key, k1, k2 = jax.random.split(key, 3)
        w1, b1 = _dense(k1, embed_dim, ffn_dim)
        w2, b2 = _dense(k2, ffn_dim, embed_dim)
        params["ffn"].append(dict(w1=w1, b1=b1, w2=w2, b2=b2))
    for _ in range(num_norm):
        params["norm"].append((jnp.ones((embed_dim,), jnp.float32),
                               jnp.zeros((embed_dim,), jnp.float32)))
    return params


# ----------------------------------------------------------------------------
# Pure-JAX reference (same math, no Pallas) for sanity checks
# ----------------------------------------------------------------------------
def _ref_mha(q_in, k_in, v_in, p, num_heads):
    B, Lq, D = q_in.shape
    Lk = k_in.shape[1]
    Dh = D // num_heads
    q = (q_in @ p["wq"] + p["bq"]).reshape(B, Lq, num_heads, Dh).transpose(0, 2, 1, 3)
    k = (k_in @ p["wk"] + p["bk"]).reshape(B, Lk, num_heads, Dh).transpose(0, 2, 1, 3)
    v = (v_in @ p["wv"] + p["bv"]).reshape(B, Lk, num_heads, Dh).transpose(0, 2, 1, 3)
    s = jnp.einsum("bhqd,bhkd->bhqk", q, k) / math.sqrt(Dh)
    w = jax.nn.softmax(s, axis=-1)
    o = jnp.einsum("bhqk,bhkd->bhqd", w, v).transpose(0, 2, 1, 3).reshape(B, Lq, D)
    return o @ p["wo"] + p["bo"], w.mean(axis=1)


def _ref_ln(x, g, b):
    mu = jnp.mean(x, axis=-1, keepdims=True)
    var = jnp.mean((x - mu) ** 2, axis=-1, keepdims=True)
    return (x - mu) * jax.lax.rsqrt(var + LN_EPS) * g + b


def ref_forward(params, query, key, value, query_pos, key_pos, num_heads):
    pre_norm = OPERATION_ORDER[0] == "norm"
    ni = ai = fi = 0
    identity = query
    attn_map = None
    for layer in OPERATION_ORDER:
        if layer in ("self_attn", "cross_attn"):
            p = params["attn"][ai]
            if layer == "self_attn":
                kk, vv, kp = query, query, query_pos
            else:
                kk, vv, kp = key, value, key_pos
            ident = identity if pre_norm else query
            q_in = query + query_pos if query_pos is not None else query
            k_in = kk + kp if kp is not None else kk
            out, amap = _ref_mha(q_in, k_in, vv, p, num_heads)
            query = ident + out
            if layer == "cross_attn":
                attn_map = amap
            identity = query
            ai += 1
        elif layer == "norm":
            g, b = params["norm"][ni]
            query = _ref_ln(query, g, b)
            ni += 1
        elif layer == "ffn":
            p = params["ffn"][fi]
            ident = identity if pre_norm else query
            h = jnp.maximum(query @ p["w1"] + p["b1"], 0.0)
            query = ident + (h @ p["w2"] + p["b2"])
            fi += 1
    return query, attn_map


# ----------------------------------------------------------------------------
if __name__ == "__main__":
    B, Lq, Lk = 2, 8, 16          # batch, num_query, num_key
    D, H, Dffn = 32, 4, 64        # embed_dim, num_heads, ffn hidden dim

    root = jax.random.PRNGKey(0)
    kq, kk, kv, kqp, kkp, kparam = jax.random.split(root, 6)
    query = jax.random.normal(kq, (B, Lq, D), jnp.float32)
    key = jax.random.normal(kk, (B, Lk, D), jnp.float32)
    value = jax.random.normal(kv, (B, Lk, D), jnp.float32)
    query_pos = jax.random.normal(kqp, (B, Lq, D), jnp.float32)
    key_pos = jax.random.normal(kkp, (B, Lk, D), jnp.float32)

    raw_params = init_params(kparam, D, H, Dffn)
    ref_out, ref_map = ref_forward(raw_params, query, key, value, query_pos, key_pos, H)

    fwd = jax.jit(functools.partial(base_transformer_layer_forward, num_heads=H))

    # bf16 MXU-operand / bf16 inter-kernel-activation path (faster on v6e/v7x).
    params_bf16 = prepare_params(raw_params, H, jnp.bfloat16)
    out, attn_map = fwd(params_bf16, query, key=key, value=value,
                        query_pos=query_pos, key_pos=key_pos)
    out = jax.block_until_ready(out)
    attn_map = jax.block_until_ready(attn_map)
    assert out.shape == (B, Lq, D) and attn_map.shape == (B, Lq, Lk)
    assert out.dtype == query.dtype
    assert jnp.allclose(out, ref_out, atol=5e-2, rtol=5e-2)
    assert jnp.allclose(attn_map.astype(jnp.float32), ref_map, atol=5e-2, rtol=5e-2)

    # full-f32 path, tighter check against the pure-JAX reference.
    params_f32 = prepare_params(raw_params, H, jnp.float32)
    out32, map32 = fwd(params_f32, query, key=key, value=value,
                       query_pos=query_pos, key_pos=key_pos)
    out32 = jax.block_until_ready(out32)
    map32 = jax.block_until_ready(map32)
    assert jnp.allclose(out32, ref_out, atol=1e-2, rtol=1e-2)
    assert jnp.allclose(map32, ref_map, atol=1e-2, rtol=1e-2)

    print("KERNEL_OK")
</pallas_src>

<mosaic_0001>
module attributes {stable_mosaic.version = 11 : i64} {
  func.func @_fused_attn_kernel(%arg0: i32, %arg1: i32, %arg2: memref<1x8x32xf32, #tpu.memory_space<vmem>>, %arg3: memref<1x8x32xf32, #tpu.memory_space<vmem>>, %arg4: memref<32x96xbf16, #tpu.memory_space<vmem>>, %arg5: memref<1x96xf32, #tpu.memory_space<vmem>>, %arg6: memref<4x8x32xbf16, #tpu.memory_space<vmem>>, %arg7: memref<1x32xf32, #tpu.memory_space<vmem>>, %arg8: memref<1x32xf32, #tpu.memory_space<vmem>>, %arg9: memref<1x32xf32, #tpu.memory_space<vmem>>, %arg10: memref<1x8x32xbf16, #tpu.memory_space<vmem>>) attributes {dimension_semantics = [#tpu.dimension_semantics<parallel>, #tpu.dimension_semantics<parallel>], iteration_bounds = array<i64: 2, 1>, scalar_prefetch = 0 : i64, scratch_operands = 0 : i64, tpu.core_type = #tpu.core_type<tc>, window_params = [{transform_indices = @transform_0, window_bounds = array<i64: 1, 8, 32>}, {transform_indices = @transform_1, window_bounds = array<i64: 1, 8, 32>}, {pipeline_mode = #tpu.pipeline_mode<synchronous>, transform_indices = @transform_2, window_bounds = array<i64: 32, 96>}, {pipeline_mode = #tpu.pipeline_mode<synchronous>, transform_indices = @transform_3, window_bounds = array<i64: 1, 96>}, {pipeline_mode = #tpu.pipeline_mode<synchronous>, transform_indices = @transform_4, window_bounds = array<i64: 4, 8, 32>}, {pipeline_mode = #tpu.pipeline_mode<synchronous>, transform_indices = @transform_5, window_bounds = array<i64: 1, 32>}, {pipeline_mode = #tpu.pipeline_mode<synchronous>, transform_indices = @transform_6, window_bounds = array<i64: 1, 32>}, {pipeline_mode = #tpu.pipeline_mode<synchronous>, transform_indices = @transform_7, window_bounds = array<i64: 1, 32>}, {transform_indices = @transform_8, window_bounds = array<i64: 1, 8, 32>}]} {
    %c0 = arith.constant 0 : index
    %c0_0 = arith.constant 0 : index
    %c0_1 = arith.constant 0 : index
    %0 = vector.load %arg2[%c0, %c0_0, %c0_1] : memref<1x8x32xf32, #tpu.memory_space<vmem>>, vector<1x8x32xf32>
    %1 = vector.shape_cast %0 : vector<1x8x32xf32> to vector<8x32xf32>
    %c0_2 = arith.constant 0 : index
    %c0_3 = arith.constant 0 : index
    %c0_4 = arith.constant 0 : index
    %2 = vector.load %arg3[%c0_2, %c0_3, %c0_4] : memref<1x8x32xf32, #tpu.memory_space<vmem>>, vector<1x8x32xf32>
    %3 = vector.shape_cast %2 : vector<1x8x32xf32> to vector<8x32xf32>
    %4 = arith.addf %1, %3 : vector<8x32xf32>
    %c0_5 = arith.constant 0 : index
    %c0_6 = arith.constant 0 : index
    %5 = vector.load %arg4[%c0_5, %c0_6] : memref<32x96xbf16, #tpu.memory_space<vmem>>, vector<32x96xbf16>
    %c0_7 = arith.constant 0 : index
    %c0_8 = arith.constant 0 : index
    %6 = vector.load %arg5[%c0_7, %c0_8] : memref<1x96xf32, #tpu.memory_space<vmem>>, vector<1x96xf32>
    %7 = arith.truncf %4 : vector<8x32xf32> to vector<8x32xbf16>
    %8 = vector.extract_strided_slice %5 {offsets = [0, 0], sizes = [32, 64], strides = [1, 1]} : vector<32x96xbf16> to vector<32x64xbf16>
    %cst = arith.constant dense<0.000000e+00> : vector<8x64xf32>
    %9 = tpu.matmul %7, %8, %cst {dimension_numbers = #tpu.dot_dimension_numbers<[1], [0], [0], [1], [0, 0, 1, 1], [], []>} : vector<8x32xbf16>, vector<32x64xbf16>, vector<8x64xf32> -> vector<8x64xf32>
    %10 = vector.extract_strided_slice %6 {offsets = [0, 0], sizes = [1, 64], strides = [1, 1]} : vector<1x96xf32> to vector<1x64xf32>
    %11 = vector.broadcast %10 : vector<1x64xf32> to vector<8x64xf32>
    %12 = arith.addf %9, %11 : vector<8x64xf32>
    %13 = arith.truncf %1 : vector<8x32xf32> to vector<8x32xbf16>
    %14 = vector.extract_strided_slice %5 {offsets = [0, 64], sizes = [32, 32], strides = [1, 1]} : vector<32x96xbf16> to vector<32x32xbf16>
    %cst_9 = arith.constant dense<0.000000e+00> : vector<8x32xf32>
    %15 = tpu.matmul %13, %14, %cst_9 {dimension_numbers = #tpu.dot_dimension_numbers<[1], [0], [0], [1], [0, 0, 1, 1], [], []>} : vector<8x32xbf16>, vector<32x32xbf16>, vector<8x32xf32> -> vector<8x32xf32>
    %16 = vector.extract_strided_slice %6 {offsets = [0, 64], sizes = [1, 32], strides = [1, 1]} : vector<1x96xf32> to vector<1x32xf32>
    %17 = vector.broadcast %16 : vector<1x32xf32> to vector<8x32xf32>
    %18 = arith.addf %15, %17 : vector<8x32xf32>
    %19 = vector.extract_strided_slice %12 {offsets = [0, 0], sizes = [8, 32], strides = [1, 1]} : vector<8x64xf32> to vector<8x32xf32>
    %20 = vector.extract_strided_slice %12 {offsets = [0, 32], sizes = [8, 32], strides = [1, 1]} : vector<8x64xf32> to vector<8x32xf32>
    %21 = vector.extract_strided_slice %19 {offsets = [0, 0], sizes = [8, 8], strides = [1, 1]} : vector<8x32xf32> to vector<8x8xf32>
    %22 = vector.extract_strided_slice %19 {offsets = [0, 8], sizes = [8, 8], strides = [1, 1]} : vector<8x32xf32> to vector<8x8xf32>
    %23 = vector.extract_strided_slice %19 {offsets = [0, 16], sizes = [8, 8], strides = [1, 1]} : vector<8x32xf32> to vector<8x8xf32>
    %24 = vector.extract_strided_slice %19 {offsets = [0, 24], sizes = [8, 8], strides = [1, 1]} : vector<8x32xf32> to vector<8x8xf32>
    %25 = vector.shape_cast %21 : vector<8x8xf32> to vector<1x8x8xf32>
    %26 = vector.shape_cast %22 : vector<8x8xf32> to vector<1x8x8xf32>
    %27 = vector.shape_cast %23 : vector<8x8xf32> to vector<1x8x8xf32>
    %28 = vector.shape_cast %24 : vector<8x8xf32> to vector<1x8x8xf32>
    %29 = tpu.concatenate %25, %26, %27, %28 in 0 : vector<1x8x8xf32>, vector<1x8x8xf32>, vector<1x8x8xf32>, vector<1x8x8xf32> -> vector<4x8x8xf32>
    %30 = arith.truncf %29 : vector<4x8x8xf32> to vector<4x8x8xbf16>
    %31 = vector.extract_strided_slice %20 {offsets = [0, 0], sizes = [8, 8], strides = [1, 1]} : vector<8x32xf32> to vector<8x8xf32>
    %32 = vector.extract_strided_slice %20 {offsets = [0, 8], sizes = [8, 8], strides = [1, 1]} : vector<8x32xf32> to vector<8x8xf32>
    %33 = vector.extract_strided_slice %20 {offsets = [0, 16], sizes = [8, 8], strides = [1, 1]} : vector<8x32xf32> to vector<8x8xf32>
    %34 = vector.extract_strided_slice %20 {offsets = [0, 24], sizes = [8, 8], strides = [1, 1]} : vector<8x32xf32> to vector<8x8xf32>
    %35 = vector.shape_cast %31 : vector<8x8xf32> to vector<1x8x8xf32>
    %36 = vector.shape_cast %32 : vector<8x8xf32> to vector<1x8x8xf32>
    %37 = vector.shape_cast %33 : vector<8x8xf32> to vector<1x8x8xf32>
    %38 = vector.shape_cast %34 : vector<8x8xf32> to vector<1x8x8xf32>
    %39 = tpu.concatenate %35, %36, %37, %38 in 0 : vector<1x8x8xf32>, vector<1x8x8xf32>, vector<1x8x8xf32>, vector<1x8x8xf32> -> vector<4x8x8xf32>
    %40 = arith.truncf %39 : vector<4x8x8xf32> to vector<4x8x8xbf16>
    %41 = vector.extract_strided_slice %18 {offsets = [0, 0], sizes = [8, 8], strides = [1, 1]} : vector<8x32xf32> to vector<8x8xf32>
    %42 = vector.extract_strided_slice %18 {offsets = [0, 8], sizes = [8, 8], strides = [1, 1]} : vector<8x32xf32> to vector<8x8xf32>
    %43 = vector.extract_strided_slice %18 {offsets = [0, 16], sizes = [8, 8], strides = [1, 1]} : vector<8x32xf32> to vector<8x8xf32>
    %44 = vector.extract_strided_slice %18 {offsets = [0, 24], sizes = [8, 8], strides = [1, 1]} : vector<8x32xf32> to vector<8x8xf32>
    %45 = vector.shape_cast %41 : vector<8x8xf32> to vector<1x8x8xf32>
    %46 = vector.shape_cast %42 : vector<8x8xf32> to vector<1x8x8xf32>
    %47 = vector.shape_cast %43 : vector<8x8xf32> to vector<1x8x8xf32>
    %48 = vector.shape_cast %44 : vector<8x8xf32> to vector<1x8x8xf32>
    %49 = tpu.concatenate %45, %46, %47, %48 in 0 : vector<1x8x8xf32>, vector<1x8x8xf32>, vector<1x8x8xf32>, vector<1x8x8xf32> -> vector<4x8x8xf32>
    %50 = arith.truncf %49 : vector<4x8x8xf32> to vector<4x8x8xbf16>
    "tpu.trace_start"() <{level = 10 : i32, message = "hqd,hkd->hqk"}> : () -> ()
    %cst_10 = arith.constant dense<0.000000e+00> : vector<4x8x8xf32>
    %51 = tpu.matmul %30, %40, %cst_10 {dimension_numbers = #tpu.dot_dimension_numbers<[2], [2], [1], [1], [0, 0, 0, 1, 1, 1], [0], [0]>} : vector<4x8x8xbf16>, vector<4x8x8xbf16>, vector<4x8x8xf32> -> vector<4x8x8xf32>
    "tpu.trace_stop"() : () -> ()
    %cst_11 = arith.constant dense<0xFF800000> : vector<4x8xf32>
    %52 = vector.multi_reduction <maximumf>, %51, %cst_11 [2] : vector<4x8x8xf32> to vector<4x8xf32>
    %53 = vector.shape_cast %52 : vector<4x8xf32> to vector<4x8x1xf32>
    %54 = vector.broadcast %53 : vector<4x8x1xf32> to vector<4x8x8xf32>
    %55 = arith.subf %51, %54 : vector<4x8x8xf32>
    %56 = math.exp %55 : vector<4x8x8xf32>
    %cst_12 = arith.constant dense<0.000000e+00> : vector<4x8xf32>
    %57 = vector.multi_reduction <add>, %56, %cst_12 [2] : vector<4x8x8xf32> to vector<4x8xf32>
    %58 = vector.shape_cast %57 : vector<4x8xf32> to vector<4x8x1xf32>
    %59 = tpu.reciprocal %58 {approx = true} : vector<4x8x1xf32> -> vector<4x8x1xf32>
    %60 = vector.broadcast %59 : vector<4x8x1xf32> to vector<4x8x8xf32>
    %61 = arith.mulf %56, %60 : vector<4x8x8xf32>
    %62 = arith.truncf %61 : vector<4x8x8xf32> to vector<4x8x8xbf16>
    "tpu.trace_start"() <{level = 10 : i32, message = "hqk,hkd->hqd"}> : () -> ()
    %cst_13 = arith.constant dense<0.000000e+00> : vector<4x8x8xf32>
    %63 = tpu.matmul %62, %50, %cst_13 {dimension_numbers = #tpu.dot_dimension_numbers<[2], [1], [1], [2], [0, 0, 0, 1, 1, 2], [0], [0]>} : vector<4x8x8xbf16>, vector<4x8x8xbf16>, vector<4x8x8xf32> -> vector<4x8x8xf32>
    "tpu.trace_stop"() : () -> ()
    %64 = arith.truncf %63 : vector<4x8x8xf32> to vector<4x8x8xbf16>
    %c0_14 = arith.constant 0 : index
    %c0_15 = arith.constant 0 : index
    %c0_16 = arith.constant 0 : index
    %65 = vector.load %arg6[%c0_14, %c0_15, %c0_16] : memref<4x8x32xbf16, #tpu.memory_space<vmem>>, vector<4x8x32xbf16>
    "tpu.trace_start"() <{level = 10 : i32, message = "hqd,hde->hqe"}> : () -> ()
    %cst_17 = arith.constant dense<0.000000e+00> : vector<4x8x32xf32>
    %66 = tpu.matmul %64, %65, %cst_17 {dimension_numbers = #tpu.dot_dimension_numbers<[2], [1], [1], [2], [0, 0, 0, 1, 1, 2], [0], [0]>} : vector<4x8x8xbf16>, vector<4x8x32xbf16>, vector<4x8x32xf32> -> vector<4x8x32xf32>
    "tpu.trace_stop"() : () -> ()
    %cst_18 = arith.constant dense<0.000000e+00> : vector<8x32xf32>
    %67 = vector.multi_reduction <add>, %66, %cst_18 [0] : vector<4x8x32xf32> to vector<8x32xf32>
    %c0_19 = arith.constant 0 : index
    %c0_20 = arith.constant 0 : index
    %68 = vector.load %arg7[%c0_19, %c0_20] : memref<1x32xf32, #tpu.memory_space<vmem>>, vector<1x32xf32>
    %69 = vector.broadcast %68 : vector<1x32xf32> to vector<8x32xf32>
    %70 = arith.addf %67, %69 : vector<8x32xf32>
    %71 = arith.addf %70, %1 : vector<8x32xf32>
    %c0_21 = arith.constant 0 : index
    %c0_22 = arith.constant 0 : index
    %72 = vector.load %arg8[%c0_21, %c0_22] : memref<1x32xf32, #tpu.memory_space<vmem>>, vector<1x32xf32>
    %c0_23 = arith.constant 0 : index
    %c0_24 = arith.constant 0 : index
    %73 = vector.load %arg9[%c0_23, %c0_24] : memref<1x32xf32, #tpu.memory_space<vmem>>, vector<1x32xf32>
    %cst_25 = arith.constant dense<0.000000e+00> : vector<8xf32>
    %74 = vector.multi_reduction <add>, %71, %cst_25 [1] : vector<8x32xf32> to vector<8xf32>
    %75 = vector.shape_cast %74 : vector<8xf32> to vector<8x1xf32>
    %cst_26 = arith.constant 3.200000e+01 : f32
    %76 = vector.broadcast %cst_26 : f32 to vector<8x1xf32>
    %77 = arith.divf %75, %76 : vector<8x1xf32>
    %78 = vector.broadcast %77 : vector<8x1xf32> to vector<8x32xf32>
    %79 = arith.subf %71, %78 : vector<8x32xf32>
    %80 = arith.mulf %79, %79 : vector<8x32xf32>
    %cst_27 = arith.constant dense<0.000000e+00> : vector<8xf32>
    %81 = vector.multi_reduction <add>, %80, %cst_27 [1] : vector<8x32xf32> to vector<8xf32>
    %82 = vector.shape_cast %81 : vector<8xf32> to vector<8x1xf32>
    %cst_28 = arith.constant 3.200000e+01 : f32
    %83 = vector.broadcast %cst_28 : f32 to vector<8x1xf32>
    %84 = arith.divf %82, %83 : vector<8x1xf32>
    %cst_29 = arith.constant 9.99999974E-6 : f32
    %85 = vector.broadcast %cst_29 : f32 to vector<8x1xf32>
    %86 = arith.addf %84, %85 : vector<8x1xf32>
    %87 = math.rsqrt %86 : vector<8x1xf32>
    %88 = vector.broadcast %87 : vector<8x1xf32> to vector<8x32xf32>
    %89 = arith.mulf %79, %88 : vector<8x32xf32>
    %90 = vector.broadcast %72 : vector<1x32xf32> to vector<8x32xf32>
    %91 = arith.mulf %89, %90 : vector<8x32xf32>
    %92 = vector.broadcast %73 : vector<1x32xf32> to vector<8x32xf32>
    %93 = arith.addf %91, %92 : vector<8x32xf32>
    %94 = arith.truncf %93 : vector<8x32xf32> to vector<8x32xbf16>
    %c0_30 = arith.constant 0 : index
    %c0_31 = arith.constant 0 : index
    %c0_32 = arith.constant 0 : index
    %95 = vector.load %arg10[%c0_30, %c0_31, %c0_32] : memref<1x8x32xbf16, #tpu.memory_space<vmem>>, vector<1x8x32xbf16>
    %96 = vector.shape_cast %95 : vector<1x8x32xbf16> to vector<8x32xbf16>
    %97 = vector.shape_cast %94 : vector<8x32xbf16> to vector<1x8x32xbf16>
    tpu.vector_store %arg10[%c0_30, %c0_31, %c0_32], %97 {strides = array<i32>} : memref<1x8x32xbf16, #tpu.memory_space<vmem>>, vector<1x8x32xbf16>,
    return
  }
  func.func @transform_0(%arg0: i32, %arg1: i32) -> (i32, i32, i32) {
    %c0_i32 = arith.constant 0 : i32
    %c0_i32_0 = arith.constant 0 : i32
    return %arg0, %arg1, %c0_i32 : i32, i32, i32
  }
  func.func @transform_1(%arg0: i32, %arg1: i32) -> (i32, i32, i32) {
    %c0_i32 = arith.constant 0 : i32
    %c0_i32_0 = arith.constant 0 : i32
    return %arg0, %arg1, %c0_i32 : i32, i32, i32
  }
  func.func @transform_2(%arg0: i32, %arg1: i32) -> (i32, i32) {
    %c0_i32 = arith.constant 0 : i32
    %c0_i32_0 = arith.constant 0 : i32
    %c0_i32_1 = arith.constant 0 : i32
    return %c0_i32, %c0_i32_0 : i32, i32
  }
  func.func @transform_3(%arg0: i32, %arg1: i32) -> (i32, i32) {
    %c0_i32 = arith.constant 0 : i32
    %c0_i32_0 = arith.constant 0 : i32
    %c0_i32_1 = arith.constant 0 : i32
    return %c0_i32, %c0_i32_0 : i32, i32
  }
  func.func @transform_4(%arg0: i32, %arg1: i32) -> (i32, i32, i32) {
    %c0_i32 = arith.constant 0 : i32
    %c0_i32_0 = arith.constant 0 : i32
    %c0_i32_1 = arith.constant 0 : i32
    %c0_i32_2 = arith.constant 0 : i32
    return %c0_i32, %c0_i32_0, %c0_i32_1 : i32, i32, i32
  }
  func.func @transform_5(%arg0: i32, %arg1: i32) -> (i32, i32) {
    %c0_i32 = arith.constant 0 : i32
    %c0_i32_0 = arith.constant 0 : i32
    %c0_i32_1 = arith.constant 0 : i32
    return %c0_i32, %c0_i32_0 : i32, i32
  }
  func.func @transform_6(%arg0: i32, %arg1: i32) -> (i32, i32) {
    %c0_i32 = arith.constant 0 : i32
    %c0_i32_0 = arith.constant 0 : i32
    %c0_i32_1 = arith.constant 0 : i32
    return %c0_i32, %c0_i32_0 : i32, i32
  }
  func.func @transform_7(%arg0: i32, %arg1: i32) -> (i32, i32) {
    %c0_i32 = arith.constant 0 : i32
    %c0_i32_0 = arith.constant 0 : i32
    %c0_i32_1 = arith.constant 0 : i32
    return %c0_i32, %c0_i32_0 : i32, i32
  }
  func.func @transform_8(%arg0: i32, %arg1: i32) -> (i32, i32, i32) {
    %c0_i32 = arith.constant 0 : i32
    %c0_i32_0 = arith.constant 0 : i32
    return %arg0, %arg1, %c0_i32 : i32, i32, i32
  }
}

module attributes {stable_mosaic.version = 11 : i64} {
  func.func @_fused_ffn_kernel(%arg0: i32, %arg1: memref<16x32xbf16, #tpu.memory_space<vmem>>, %arg2: memref<32x64xbf16, #tpu.memory_space<vmem>>, %arg3: memref<1x64xf32, #tpu.memory_space<vmem>>, %arg4: memref<64x32xbf16, #tpu.memory_space<vmem>>, %arg5: memref<1x32xf32, #tpu.memory_space<vmem>>, %arg6: memref<1x32xf32, #tpu.memory_space<vmem>>, %arg7: memref<1x32xf32, #tpu.memory_space<vmem>>, %arg8: memref<16x32xf32, #tpu.memory_space<vmem>>) attributes {dimension_semantics = [#tpu.dimension_semantics<parallel>], iteration_bounds = array<i64: 1>, scalar_prefetch = 0 : i64, scratch_operands = 0 : i64, tpu.core_type = #tpu.core_type<tc>, window_params = [{transform_indices = @transform_0, window_bounds = array<i64: 16, 32>}, {pipeline_mode = #tpu.pipeline_mode<synchronous>, transform_indices = @transform_1, window_bounds = array<i64: 32, 64>}, {pipeline_mode = #tpu.pipeline_mode<synchronous>, transform_indices = @transform_2, window_bounds = array<i64: 1, 64>}, {pipeline_mode = #tpu.pipeline_mode<synchronous>, transform_indices = @transform_3, window_bounds = array<i64: 64, 32>}, {pipeline_mode = #tpu.pipeline_mode<synchronous>, transform_indices = @transform_4, window_bounds = array<i64: 1, 32>}, {pipeline_mode = #tpu.pipeline_mode<synchronous>, transform_indices = @transform_5, window_bounds = array<i64: 1, 32>}, {pipeline_mode = #tpu.pipeline_mode<synchronous>, transform_indices = @transform_6, window_bounds = array<i64: 1, 32>}, {transform_indices = @transform_7, window_bounds = array<i64: 16, 32>}]} {
    %c0 = arith.constant 0 : index
    %c0_0 = arith.constant 0 : index
    %0 = vector.load %arg1[%c0, %c0_0] : memref<16x32xbf16, #tpu.memory_space<vmem>>, vector<16x32xbf16>
    %1 = arith.extf %0 : vector<16x32xbf16> to vector<16x32xf32>
    %2 = arith.truncf %1 : vector<16x32xf32> to vector<16x32xbf16>
    %c0_1 = arith.constant 0 : index
    %c0_2 = arith.constant 0 : index
    %3 = vector.load %arg2[%c0_1, %c0_2] : memref<32x64xbf16, #tpu.memory_space<vmem>>, vector<32x64xbf16>
    %cst = arith.constant dense<0.000000e+00> : vector<16x64xf32>
    %4 = tpu.matmul %2, %3, %cst {dimension_numbers = #tpu.dot_dimension_numbers<[1], [0], [0], [1], [0, 0, 1, 1], [], []>} : vector<16x32xbf16>, vector<32x64xbf16>, vector<16x64xf32> -> vector<16x64xf32>
    %c0_3 = arith.constant 0 : index
    %c0_4 = arith.constant 0 : index
    %5 = vector.load %arg3[%c0_3, %c0_4] : memref<1x64xf32, #tpu.memory_space<vmem>>, vector<1x64xf32>
    %6 = vector.broadcast %5 : vector<1x64xf32> to vector<16x64xf32>
    %7 = arith.addf %4, %6 : vector<16x64xf32>
    %cst_5 = arith.constant 0.000000e+00 : f32
    %8 = vector.broadcast %cst_5 : f32 to vector<16x64xf32>
    %9 = arith.maximumf %7, %8 : vector<16x64xf32>
    %10 = arith.truncf %9 : vector<16x64xf32> to vector<16x64xbf16>
    %c0_6 = arith.constant 0 : index
    %c0_7 = arith.constant 0 : index
    %11 = vector.load %arg4[%c0_6, %c0_7] : memref<64x32xbf16, #tpu.memory_space<vmem>>, vector<64x32xbf16>
    %cst_8 = arith.constant dense<0.000000e+00> : vector<16x32xf32>
    %12 = tpu.matmul %10, %11, %cst_8 {dimension_numbers = #tpu.dot_dimension_numbers<[1], [0], [0], [1], [0, 0, 1, 1], [], []>} : vector<16x64xbf16>, vector<64x32xbf16>, vector<16x32xf32> -> vector<16x32xf32>
    %c0_9 = arith.constant 0 : index
    %c0_10 = arith.constant 0 : index
    %13 = vector.load %arg5[%c0_9, %c0_10] : memref<1x32xf32, #tpu.memory_space<vmem>>, vector<1x32xf32>
    %14 = vector.broadcast %13 : vector<1x32xf32> to vector<16x32xf32>
    %15 = arith.addf %12, %14 : vector<16x32xf32>
    %16 = arith.addf %15, %1 : vector<16x32xf32>
    %c0_11 = arith.constant 0 : index
    %c0_12 = arith.constant 0 : index
    %17 = vector.load %arg6[%c0_11, %c0_12] : memref<1x32xf32, #tpu.memory_space<vmem>>, vector<1x32xf32>
    %c0_13 = arith.constant 0 : index
    %c0_14 = arith.constant 0 : index
    %18 = vector.load %arg7[%c0_13, %c0_14] : memref<1x32xf32, #tpu.memory_space<vmem>>, vector<1x32xf32>
    %cst_15 = arith.constant dense<0.000000e+00> : vector<16xf32>
    %19 = vector.multi_reduction <add>, %16, %cst_15 [1] : vector<16x32xf32> to vector<16xf32>
    %20 = vector.shape_cast %19 : vector<16xf32> to vector<16x1xf32>
    %cst_16 = arith.constant 3.200000e+01 : f32
    %21 = vector.broadcast %cst_16 : f32 to vector<16x1xf32>
    %22 = arith.divf %20, %21 : vector<16x1xf32>
    %23 = vector.broadcast %22 : vector<16x1xf32> to vector<16x32xf32>
    %24 = arith.subf %16, %23 : vector<16x32xf32>
    %25 = arith.mulf %24, %24 : vector<16x32xf32>
    %cst_17 = arith.constant dense<0.000000e+00> : vector<16xf32>
    %26 = vector.multi_reduction <add>, %25, %cst_17 [1] : vector<16x32xf32> to vector<16xf32>
    %27 = vector.shape_cast %26 : vector<16xf32> to vector<16x1xf32>
    %cst_18 = arith.constant 3.200000e+01 : f32
    %28 = vector.broadcast %cst_18 : f32 to vector<16x1xf32>
    %29 = arith.divf %27, %28 : vector<16x1xf32>
    %cst_19 = arith.constant 9.99999974E-6 : f32
    %30 = vector.broadcast %cst_19 : f32 to vector<16x1xf32>
    %31 = arith.addf %29, %30 : vector<16x1xf32>
    %32 = math.rsqrt %31 : vector<16x1xf32>
    %33 = vector.broadcast %32 : vector<16x1xf32> to vector<16x32xf32>
    %34 = arith.mulf %24, %33 : vector<16x32xf32>
    %35 = vector.broadcast %17 : vector<1x32xf32> to vector<16x32xf32>
    %36 = arith.mulf %34, %35 : vector<16x32xf32>
    %37 = vector.broadcast %18 : vector<1x32xf32> to vector<16x32xf32>
    %38 = arith.addf %36, %37 : vector<16x32xf32>
    %c0_20 = arith.constant 0 : index
    %c0_21 = arith.constant 0 : index
    %39 = vector.load %arg8[%c0_20, %c0_21] : memref<16x32xf32, #tpu.memory_space<vmem>>, vector<16x32xf32>
    tpu.vector_store %arg8[%c0_20, %c0_21], %38 {strides = array<i32>} : memref<16x32xf32, #tpu.memory_space<vmem>>, vector<16x32xf32>,
    return
  }
  func.func @transform_0(%arg0: i32) -> (i32, i32) {
    %c0_i32 = arith.constant 0 : i32
    %c0_i32_0 = arith.constant 0 : i32
    return %arg0, %c0_i32 : i32, i32
  }
  func.func @transform_1(%arg0: i32) -> (i32, i32) {
    %c0_i32 = arith.constant 0 : i32
    %c0_i32_0 = arith.constant 0 : i32
    %c0_i32_1 = arith.constant 0 : i32
    return %c0_i32, %c0_i32_0 : i32, i32
  }
  func.func @transform_2(%arg0: i32) -> (i32, i32) {
    %c0_i32 = arith.constant 0 : i32
    %c0_i32_0 = arith.constant 0 : i32
    %c0_i32_1 = arith.constant 0 : i32
    return %c0_i32, %c0_i32_0 : i32, i32
  }
  func.func @transform_3(%arg0: i32) -> (i32, i32) {
    %c0_i32 = arith.constant 0 : i32
    %c0_i32_0 = arith.constant 0 : i32
    %c0_i32_1 = arith.constant 0 : i32
    return %c0_i32, %c0_i32_0 : i32, i32
  }
  func.func @transform_4(%arg0: i32) -> (i32, i32) {
    %c0_i32 = arith.constant 0 : i32
    %c0_i32_0 = arith.constant 0 : i32
    %c0_i32_1 = arith.constant 0 : i32
    return %c0_i32, %c0_i32_0 : i32, i32
  }
  func.func @transform_5(%arg0: i32) -> (i32, i32) {
    %c0_i32 = arith.constant 0 : i32
    %c0_i32_0 = arith.constant 0 : i32
    %c0_i32_1 = arith.constant 0 : i32
    return %c0_i32, %c0_i32_0 : i32, i32
  }
  func.func @transform_6(%arg0: i32) -> (i32, i32) {
    %c0_i32 = arith.constant 0 : i32
    %c0_i32_0 = arith.constant 0 : i32
    %c0_i32_1 = arith.constant 0 : i32
    return %c0_i32, %c0_i32_0 : i32, i32
  }
  func.func @transform_7(%arg0: i32) -> (i32, i32) {
    %c0_i32 = arith.constant 0 : i32
    %c0_i32_0 = arith.constant 0 : i32
    return %arg0, %c0_i32 : i32, i32
  }
}

module attributes {stable_mosaic.version = 11 : i64} {
  func.func @_fused_attn_kernel(%arg0: i32, %arg1: i32, %arg2: memref<1x8x32xbf16, #tpu.memory_space<vmem>>, %arg3: memref<1x16x32xf32, #tpu.memory_space<vmem>>, %arg4: memref<1x16x32xf32, #tpu.memory_space<vmem>>, %arg5: memref<1x8x32xf32, #tpu.memory_space<vmem>>, %arg6: memref<1x16x32xf32, #tpu.memory_space<vmem>>, %arg7: memref<32x96xbf16, #tpu.memory_space<vmem>>, %arg8: memref<1x96xf32, #tpu.memory_space<vmem>>, %arg9: memref<4x8x32xbf16, #tpu.memory_space<vmem>>, %arg10: memref<1x32xf32, #tpu.memory_space<vmem>>, %arg11: memref<1x32xf32, #tpu.memory_space<vmem>>, %arg12: memref<1x32xf32, #tpu.memory_space<vmem>>, %arg13: memref<1x8x32xbf16, #tpu.memory_space<vmem>>, %arg14: memref<1x8x16xbf16, #tpu.memory_space<vmem>>) attributes {dimension_semantics = [#tpu.dimension_semantics<parallel>, #tpu.dimension_semantics<parallel>], iteration_bounds = array<i64: 2, 1>, scalar_prefetch = 0 : i64, scratch_operands = 0 : i64, tpu.core_type = #tpu.core_type<tc>, window_params = [{transform_indices = @transform_0, window_bounds = array<i64: 1, 8, 32>}, {transform_indices = @transform_1, window_bounds = array<i64: 1, 16, 32>}, {transform_indices = @transform_2, window_bounds = array<i64: 1, 16, 32>}, {transform_indices = @transform_3, window_bounds = array<i64: 1, 8, 32>}, {transform_indices = @transform_4, window_bounds = array<i64: 1, 16, 32>}, {pipeline_mode = #tpu.pipeline_mode<synchronous>, transform_indices = @transform_5, window_bounds = array<i64: 32, 96>}, {pipeline_mode = #tpu.pipeline_mode<synchronous>, transform_indices = @transform_6, window_bounds = array<i64: 1, 96>}, {pipeline_mode = #tpu.pipeline_mode<synchronous>, transform_indices = @transform_7, window_bounds = array<i64: 4, 8, 32>}, {pipeline_mode = #tpu.pipeline_mode<synchronous>, transform_indices = @transform_8, window_bounds = array<i64: 1, 32>}, {pipeline_mode = #tpu.pipeline_mode<synchronous>, transform_indices = @transform_9, window_bounds = array<i64: 1, 32>}, {pipeline_mode = #tpu.pipeline_mode<synchronous>, transform_indices = @transform_10, window_bounds = array<i64: 1, 32>}, {transform_indices = @transform_11, window_bounds = array<i64: 1, 8, 32>}, {transform_indices = @transform_12, window_bounds = array<i64: 1, 8, 16>}]} {
    %c0 = arith.constant 0 : index
    %c0_0 = arith.constant 0 : index
    %c0_1 = arith.constant 0 : index
    %0 = vector.load %arg2[%c0, %c0_0, %c0_1] : memref<1x8x32xbf16, #tpu.memory_space<vmem>>, vector<1x8x32xbf16>
    %1 = vector.shape_cast %0 : vector<1x8x32xbf16> to vector<8x32xbf16>
    %2 = arith.extf %1 : vector<8x32xbf16> to vector<8x32xf32>
    %c0_2 = arith.constant 0 : index
    %c0_3 = arith.constant 0 : index
    %c0_4 = arith.constant 0 : index
    %3 = vector.load %arg5[%c0_2, %c0_3, %c0_4] : memref<1x8x32xf32, #tpu.memory_space<vmem>>, vector<1x8x32xf32>
    %4 = vector.shape_cast %3 : vector<1x8x32xf32> to vector<8x32xf32>
    %5 = arith.addf %2, %4 : vector<8x32xf32>
    %c0_5 = arith.constant 0 : index
    %c0_6 = arith.constant 0 : index
    %6 = vector.load %arg7[%c0_5, %c0_6] : memref<32x96xbf16, #tpu.memory_space<vmem>>, vector<32x96xbf16>
    %c0_7 = arith.constant 0 : index
    %c0_8 = arith.constant 0 : index
    %7 = vector.load %arg8[%c0_7, %c0_8] : memref<1x96xf32, #tpu.memory_space<vmem>>, vector<1x96xf32>
    %c0_9 = arith.constant 0 : index
    %c0_10 = arith.constant 0 : index
    %c0_11 = arith.constant 0 : index
    %8 = vector.load %arg3[%c0_9, %c0_10, %c0_11] : memref<1x16x32xf32, #tpu.memory_space<vmem>>, vector<1x16x32xf32>
    %9 = vector.shape_cast %8 : vector<1x16x32xf32> to vector<16x32xf32>
    %c0_12 = arith.constant 0 : index
    %c0_13 = arith.constant 0 : index
    %c0_14 = arith.constant 0 : index
    %10 = vector.load %arg4[%c0_12, %c0_13, %c0_14] : memref<1x16x32xf32, #tpu.memory_space<vmem>>, vector<1x16x32xf32>
    %11 = vector.shape_cast %10 : vector<1x16x32xf32> to vector<16x32xf32>
    %c0_15 = arith.constant 0 : index
    %c0_16 = arith.constant 0 : index
    %c0_17 = arith.constant 0 : index
    %12 = vector.load %arg6[%c0_15, %c0_16, %c0_17] : memref<1x16x32xf32, #tpu.memory_space<vmem>>, vector<1x16x32xf32>
    %13 = vector.shape_cast %12 : vector<1x16x32xf32> to vector<16x32xf32>
    %14 = arith.addf %9, %13 : vector<16x32xf32>
    %15 = arith.truncf %5 : vector<8x32xf32> to vector<8x32xbf16>
    %16 = vector.extract_strided_slice %6 {offsets = [0, 0], sizes = [32, 32], strides = [1, 1]} : vector<32x96xbf16> to vector<32x32xbf16>
    %cst = arith.constant dense<0.000000e+00> : vector<8x32xf32>
    %17 = tpu.matmul %15, %16, %cst {dimension_numbers = #tpu.dot_dimension_numbers<[1], [0], [0], [1], [0, 0, 1, 1], [], []>} : vector<8x32xbf16>, vector<32x32xbf16>, vector<8x32xf32> -> vector<8x32xf32>
    %18 = vector.extract_strided_slice %7 {offsets = [0, 0], sizes = [1, 32], strides = [1, 1]} : vector<1x96xf32> to vector<1x32xf32>
    %19 = vector.broadcast %18 : vector<1x32xf32> to vector<8x32xf32>
    %20 = arith.addf %17, %19 : vector<8x32xf32>
    %21 = arith.truncf %14 : vector<16x32xf32> to vector<16x32xbf16>
    %22 = vector.extract_strided_slice %6 {offsets = [0, 32], sizes = [32, 32], strides = [1, 1]} : vector<32x96xbf16> to vector<32x32xbf16>
    %cst_18 = arith.constant dense<0.000000e+00> : vector<16x32xf32>
    %23 = tpu.matmul %21, %22, %cst_18 {dimension_numbers = #tpu.dot_dimension_numbers<[1], [0], [0], [1], [0, 0, 1, 1], [], []>} : vector<16x32xbf16>, vector<32x32xbf16>, vector<16x32xf32> -> vector<16x32xf32>
    %24 = vector.extract_strided_slice %7 {offsets = [0, 32], sizes = [1, 32], strides = [1, 1]} : vector<1x96xf32> to vector<1x32xf32>
    %25 = vector.broadcast %24 : vector<1x32xf32> to vector<16x32xf32>
    %26 = arith.addf %23, %25 : vector<16x32xf32>
    %27 = arith.truncf %11 : vector<16x32xf32> to vector<16x32xbf16>
    %28 = vector.extract_strided_slice %6 {offsets = [0, 64], sizes = [32, 32], strides = [1, 1]} : vector<32x96xbf16> to vector<32x32xbf16>
    %cst_19 = arith.constant dense<0.000000e+00> : vector<16x32xf32>
    %29 = tpu.matmul %27, %28, %cst_19 {dimension_numbers = #tpu.dot_dimension_numbers<[1], [0], [0], [1], [0, 0, 1, 1], [], []>} : vector<16x32xbf16>, vector<32x32xbf16>, vector<16x32xf32> -> vector<16x32xf32>
    %30 = vector.extract_strided_slice %7 {offsets = [0, 64], sizes = [1, 32], strides = [1, 1]} : vector<1x96xf32> to vector<1x32xf32>
    %31 = vector.broadcast %30 : vector<1x32xf32> to vector<16x32xf32>
    %32 = arith.addf %29, %31 : vector<16x32xf32>
    %33 = vector.extract_strided_slice %20 {offsets = [0, 0], sizes = [8, 8], strides = [1, 1]} : vector<8x32xf32> to vector<8x8xf32>
    %34 = vector.extract_strided_slice %20 {offsets = [0, 8], sizes = [8, 8], strides = [1, 1]} : vector<8x32xf32> to vector<8x8xf32>
    %35 = vector.extract_strided_slice %20 {offsets = [0, 16], sizes = [8, 8], strides = [1, 1]} : vector<8x32xf32> to vector<8x8xf32>
    %36 = vector.extract_strided_slice %20 {offsets = [0, 24], sizes = [8, 8], strides = [1, 1]} : vector<8x32xf32> to vector<8x8xf32>
    %37 = vector.shape_cast %33 : vector<8x8xf32> to vector<1x8x8xf32>
    %38 = vector.shape_cast %34 : vector<8x8xf32> to vector<1x8x8xf32>
    %39 = vector.shape_cast %35 : vector<8x8xf32> to vector<1x8x8xf32>
    %40 = vector.shape_cast %36 : vector<8x8xf32> to vector<1x8x8xf32>
    %41 = tpu.concatenate %37, %38, %39, %40 in 0 : vector<1x8x8xf32>, vector<1x8x8xf32>, vector<1x8x8xf32>, vector<1x8x8xf32> -> vector<4x8x8xf32>
    %42 = arith.truncf %41 : vector<4x8x8xf32> to vector<4x8x8xbf16>
    %43 = vector.extract_strided_slice %26 {offsets = [0, 0], sizes = [16, 8], strides = [1, 1]} : vector<16x32xf32> to vector<16x8xf32>
    %44 = vector.extract_strided_slice %26 {offsets = [0, 8], sizes = [16, 8], strides = [1, 1]} : vector<16x32xf32> to vector<16x8xf32>
    %45 = vector.extract_strided_slice %26 {offsets = [0, 16], sizes = [16, 8], strides = [1, 1]} : vector<16x32xf32> to vector<16x8xf32>
    %46 = vector.extract_strided_slice %26 {offsets = [0, 24], sizes = [16, 8], strides = [1, 1]} : vector<16x32xf32> to vector<16x8xf32>
    %47 = vector.shape_cast %43 : vector<16x8xf32> to vector<1x16x8xf32>
    %48 = vector.shape_cast %44 : vector<16x8xf32> to vector<1x16x8xf32>
    %49 = vector.shape_cast %45 : vector<16x8xf32> to vector<1x16x8xf32>
    %50 = vector.shape_cast %46 : vector<16x8xf32> to vector<1x16x8xf32>
    %51 = tpu.concatenate %47, %48, %49, %50 in 0 : vector<1x16x8xf32>, vector<1x16x8xf32>, vector<1x16x8xf32>, vector<1x16x8xf32> -> vector<4x16x8xf32>
    %52 = arith.truncf %51 : vector<4x16x8xf32> to vector<4x16x8xbf16>
    %53 = vector.extract_strided_slice %32 {offsets = [0, 0], sizes = [16, 8], strides = [1, 1]} : vector<16x32xf32> to vector<16x8xf32>
    %54 = vector.extract_strided_slice %32 {offsets = [0, 8], sizes = [16, 8], strides = [1, 1]} : vector<16x32xf32> to vector<16x8xf32>
    %55 = vector.extract_strided_slice %32 {offsets = [0, 16], sizes = [16, 8], strides = [1, 1]} : vector<16x32xf32> to vector<16x8xf32>
    %56 = vector.extract_strided_slice %32 {offsets = [0, 24], sizes = [16, 8], strides = [1, 1]} : vector<16x32xf32> to vector<16x8xf32>
    %57 = vector.shape_cast %53 : vector<16x8xf32> to vector<1x16x8xf32>
    %58 = vector.shape_cast %54 : vector<16x8xf32> to vector<1x16x8xf32>
    %59 = vector.shape_cast %55 : vector<16x8xf32> to vector<1x16x8xf32>
    %60 = vector.shape_cast %56 : vector<16x8xf32> to vector<1x16x8xf32>
    %61 = tpu.concatenate %57, %58, %59, %60 in 0 : vector<1x16x8xf32>, vector<1x16x8xf32>, vector<1x16x8xf32>, vector<1x16x8xf32> -> vector<4x16x8xf32>
    %62 = arith.truncf %61 : vector<4x16x8xf32> to vector<4x16x8xbf16>
    "tpu.trace_start"() <{level = 10 : i32, message = "hqd,hkd->hqk"}> : () -> ()
    %cst_20 = arith.constant dense<0.000000e+00> : vector<4x8x16xf32>
    %63 = tpu.matmul %42, %52, %cst_20 {dimension_numbers = #tpu.dot_dimension_numbers<[2], [2], [1], [1], [0, 0, 0, 1, 1, 1], [0], [0]>} : vector<4x8x8xbf16>, vector<4x16x8xbf16>, vector<4x8x16xf32> -> vector<4x8x16xf32>
    "tpu.trace_stop"() : () -> ()
    %cst_21 = arith.constant dense<0xFF800000> : vector<4x8xf32>
    %64 = vector.multi_reduction <maximumf>, %63, %cst_21 [2] : vector<4x8x16xf32> to vector<4x8xf32>
    %65 = vector.shape_cast %64 : vector<4x8xf32> to vector<4x8x1xf32>
    %66 = vector.broadcast %65 : vector<4x8x1xf32> to vector<4x8x16xf32>
    %67 = arith.subf %63, %66 : vector<4x8x16xf32>
    %68 = math.exp %67 : vector<4x8x16xf32>
    %cst_22 = arith.constant dense<0.000000e+00> : vector<4x8xf32>
    %69 = vector.multi_reduction <add>, %68, %cst_22 [2] : vector<4x8x16xf32> to vector<4x8xf32>
    %70 = vector.shape_cast %69 : vector<4x8xf32> to vector<4x8x1xf32>
    %71 = tpu.reciprocal %70 {approx = true} : vector<4x8x1xf32> -> vector<4x8x1xf32>
    %72 = vector.broadcast %71 : vector<4x8x1xf32> to vector<4x8x16xf32>
    %73 = arith.mulf %68, %72 : vector<4x8x16xf32>
    %74 = arith.truncf %73 : vector<4x8x16xf32> to vector<4x8x16xbf16>
    "tpu.trace_start"() <{level = 10 : i32, message = "hqk,hkd->hqd"}> : () -> ()
    %cst_23 = arith.constant dense<0.000000e+00> : vector<4x8x8xf32>
    %75 = tpu.matmul %74, %62, %cst_23 {dimension_numbers = #tpu.dot_dimension_numbers<[2], [1], [1], [2], [0, 0, 0, 1, 1, 2], [0], [0]>} : vector<4x8x16xbf16>, vector<4x16x8xbf16>, vector<4x8x8xf32> -> vector<4x8x8xf32>
    "tpu.trace_stop"() : () -> ()
    %76 = arith.truncf %75 : vector<4x8x8xf32> to vector<4x8x8xbf16>
    %c0_24 = arith.constant 0 : index
    %c0_25 = arith.constant 0 : index
    %c0_26 = arith.constant 0 : index
    %77 = vector.load %arg9[%c0_24, %c0_25, %c0_26] : memref<4x8x32xbf16, #tpu.memory_space<vmem>>, vector<4x8x32xbf16>
    "tpu.trace_start"() <{level = 10 : i32, message = "hqd,hde->hqe"}> : () -> ()
    %cst_27 = arith.constant dense<0.000000e+00> : vector<4x8x32xf32>
    %78 = tpu.matmul %76, %77, %cst_27 {dimension_numbers = #tpu.dot_dimension_numbers<[2], [1], [1], [2], [0, 0, 0, 1, 1, 2], [0], [0]>} : vector<4x8x8xbf16>, vector<4x8x32xbf16>, vector<4x8x32xf32> -> vector<4x8x32xf32>
    "tpu.trace_stop"() : () -> ()
    %cst_28 = arith.constant dense<0.000000e+00> : vector<8x32xf32>
    %79 = vector.multi_reduction <add>, %78, %cst_28 [0] : vector<4x8x32xf32> to vector<8x32xf32>
    %c0_29 = arith.constant 0 : index
    %c0_30 = arith.constant 0 : index
    %80 = vector.load %arg10[%c0_29, %c0_30] : memref<1x32xf32, #tpu.memory_space<vmem>>, vector<1x32xf32>
    %81 = vector.broadcast %80 : vector<1x32xf32> to vector<8x32xf32>
    %82 = arith.addf %79, %81 : vector<8x32xf32>
    %83 = arith.addf %82, %2 : vector<8x32xf32>
    %c0_31 = arith.constant 0 : index
    %c0_32 = arith.constant 0 : index
    %84 = vector.load %arg11[%c0_31, %c0_32] : memref<1x32xf32, #tpu.memory_space<vmem>>, vector<1x32xf32>
    %c0_33 = arith.constant 0 : index
    %c0_34 = arith.constant 0 : index
    %85 = vector.load %arg12[%c0_33, %c0_34] : memref<1x32xf32, #tpu.memory_space<vmem>>, vector<1x32xf32>
    %cst_35 = arith.constant dense<0.000000e+00> : vector<8xf32>
    %86 = vector.multi_reduction <add>, %83, %cst_35 [1] : vector<8x32xf32> to vector<8xf32>
    %87 = vector.shape_cast %86 : vector<8xf32> to vector<8x1xf32>
    %cst_36 = arith.constant 3.200000e+01 : f32
    %88 = vector.broadcast %cst_36 : f32 to vector<8x1xf32>
    %89 = arith.divf %87, %88 : vector<8x1xf32>
    %90 = vector.broadcast %89 : vector<8x1xf32> to vector<8x32xf32>
    %91 = arith.subf %83, %90 : vector<8x32xf32>
    %92 = arith.mulf %91, %91 : vector<8x32xf32>
    %cst_37 = arith.constant dense<0.000000e+00> : vector<8xf32>
    %93 = vector.multi_reduction <add>, %92, %cst_37 [1] : vector<8x32xf32> to vector<8xf32>
    %94 = vector.shape_cast %93 : vector<8xf32> to vector<8x1xf32>
    %cst_38 = arith.constant 3.200000e+01 : f32
    %95 = vector.broadcast %cst_38 : f32 to vector<8x1xf32>
    %96 = arith.divf %94, %95 : vector<8x1xf32>
    %cst_39 = arith.constant 9.99999974E-6 : f32
    %97 = vector.broadcast %cst_39 : f32 to vector<8x1xf32>
    %98 = arith.addf %96, %97 : vector<8x1xf32>
    %99 = math.rsqrt %98 : vector<8x1xf32>
    %100 = vector.broadcast %99 : vector<8x1xf32> to vector<8x32xf32>
    %101 = arith.mulf %91, %100 : vector<8x32xf32>
    %102 = vector.broadcast %84 : vector<1x32xf32> to vector<8x32xf32>
    %103 = arith.mulf %101, %102 : vector<8x32xf32>
    %104 = vector.broadcast %85 : vector<1x32xf32> to vector<8x32xf32>
    %105 = arith.addf %103, %104 : vector<8x32xf32>
    %106 = arith.truncf %105 : vector<8x32xf32> to vector<8x32xbf16>
    %c0_40 = arith.constant 0 : index
    %c0_41 = arith.constant 0 : index
    %c0_42 = arith.constant 0 : index
    %107 = vector.load %arg13[%c0_40, %c0_41, %c0_42] : memref<1x8x32xbf16, #tpu.memory_space<vmem>>, vector<1x8x32xbf16>
    %108 = vector.shape_cast %107 : vector<1x8x32xbf16> to vector<8x32xbf16>
    %109 = vector.shape_cast %106 : vector<8x32xbf16> to vector<1x8x32xbf16>
    tpu.vector_store %arg13[%c0_40, %c0_41, %c0_42], %109 {strides = array<i32>} : memref<1x8x32xbf16, #tpu.memory_space<vmem>>, vector<1x8x32xbf16>,
    %cst_43 = arith.constant dense<0.000000e+00> : vector<8x16xf32>
    %110 = vector.multi_reduction <add>, %73, %cst_43 [0] : vector<4x8x16xf32> to vector<8x16xf32>
    %cst_44 = arith.constant 4.000000e+00 : f32
    %111 = vector.broadcast %cst_44 : f32 to vector<8x16xf32>
    %112 = arith.divf %110, %111 : vector<8x16xf32>
    %113 = arith.truncf %112 : vector<8x16xf32> to vector<8x16xbf16>
    %c0_45 = arith.constant 0 : index
    %c0_46 = arith.constant 0 : index
    %c0_47 = arith.constant 0 : index
    %114 = vector.load %arg14[%c0_45, %c0_46, %c0_47] : memref<1x8x16xbf16, #tpu.memory_space<vmem>>, vector<1x8x16xbf16>
    %115 = vector.shape_cast %114 : vector<1x8x16xbf16> to vector<8x16xbf16>
    %116 = vector.shape_cast %113 : vector<8x16xbf16> to vector<1x8x16xbf16>
    tpu.vector_store %arg14[%c0_45, %c0_46, %c0_47], %116 {strides = array<i32>} : memref<1x8x16xbf16, #tpu.memory_space<vmem>>, vector<1x8x16xbf16>,
    return
  }
  func.func @transform_0(%arg0: i32, %arg1: i32) -> (i32, i32, i32) {
    %c0_i32 = arith.constant 0 : i32
    %c0_i32_0 = arith.constant 0 : i32
    return %arg0, %arg1, %c0_i32 : i32, i32, i32
  }
  func.func @transform_1(%arg0: i32, %arg1: i32) -> (i32, i32, i32) {
    %c0_i32 = arith.constant 0 : i32
    %c0_i32_0 = arith.constant 0 : i32
    %c0_i32_1 = arith.constant 0 : i32
    return %arg0, %c0_i32, %c0_i32_0 : i32, i32, i32
  }
  func.func @transform_2(%arg0: i32, %arg1: i32) -> (i32, i32, i32) {
    %c0_i32 = arith.constant 0 : i32
    %c0_i32_0 = arith.constant 0 : i32
    %c0_i32_1 = arith.constant 0 : i32
    return %arg0, %c0_i32, %c0_i32_0 : i32, i32, i32
  }
  func.func @transform_3(%arg0: i32, %arg1: i32) -> (i32, i32, i32) {
    %c0_i32 = arith.constant 0 : i32
    %c0_i32_0 = arith.constant 0 : i32
    return %arg0, %arg1, %c0_i32 : i32, i32, i32
  }
  func.func @transform_4(%arg0: i32, %arg1: i32) -> (i32, i32, i32) {
    %c0_i32 = arith.constant 0 : i32
    %c0_i32_0 = arith.constant 0 : i32
    %c0_i32_1 = arith.constant 0 : i32
    return %arg0, %c0_i32, %c0_i32_0 : i32, i32, i32
  }
  func.func @transform_5(%arg0: i32, %arg1: i32) -> (i32, i32) {
    %c0_i32 = arith.constant 0 : i32
    %c0_i32_0 = arith.constant 0 : i32
    %c0_i32_1 = arith.constant 0 : i32
    return %c0_i32, %c0_i32_0 : i32, i32
  }
  func.func @transform_6(%arg0: i32, %arg1: i32) -> (i32, i32) {
    %c0_i32 = arith.constant 0 : i32
    %c0_i32_0 = arith.constant 0 : i32
    %c0_i32_1 = arith.constant 0 : i32
    return %c0_i32, %c0_i32_0 : i32, i32
  }
  func.func @transform_7(%arg0: i32, %arg1: i32) -> (i32, i32, i32) {
    %c0_i32 = arith.constant 0 : i32
    %c0_i32_0 = arith.constant 0 : i32
    %c0_i32_1 = arith.constant 0 : i32
    %c0_i32_2 = arith.constant 0 : i32
    return %c0_i32, %c0_i32_0, %c0_i32_1 : i32, i32, i32
  }
  func.func @transform_8(%arg0: i32, %arg1: i32) -> (i32, i32) {
    %c0_i32 = arith.constant 0 : i32
    %c0_i32_0 = arith.constant 0 : i32
    %c0_i32_1 = arith.constant 0 : i32
    return %c0_i32, %c0_i32_0 : i32, i32
  }
  func.func @transform_9(%arg0: i32, %arg1: i32) -> (i32, i32) {
    %c0_i32 = arith.constant 0 : i32
    %c0_i32_0 = arith.constant 0 : i32
    %c0_i32_1 = arith.constant 0 : i32
    return %c0_i32, %c0_i32_0 : i32, i32
  }
  func.func @transform_10(%arg0: i32, %arg1: i32) -> (i32, i32) {
    %c0_i32 = arith.constant 0 : i32
    %c0_i32_0 = arith.constant 0 : i32
    %c0_i32_1 = arith.constant 0 : i32
    return %c0_i32, %c0_i32_0 : i32, i32
  }
  func.func @transform_11(%arg0: i32, %arg1: i32) -> (i32, i32, i32) {
    %c0_i32 = arith.constant 0 : i32
    %c0_i32_0 = arith.constant 0 : i32
    return %arg0, %arg1, %c0_i32 : i32, i32, i32
  }
  func.func @transform_12(%arg0: i32, %arg1: i32) -> (i32, i32, i32) {
    %c0_i32 = arith.constant 0 : i32
    %c0_i32_0 = arith.constant 0 : i32
    return %arg0, %arg1, %c0_i32 : i32, i32, i32
  }
}

</mosaic_0001>

<bundles_post_ra>
// kernel: base_transformer_layer_forward.5
= control target key start
LH: loop header
LB: loop body
LE: loop exit
PB: predicated region body
PF: predicated region fallthrough
CT: control target
= control target key end

     0   :  { %v339_v1 = vmov 0.0   ;;  %vm340_vm0 = vmmov 0   ;;  %vm60_vm1 = vcmask 261120   ;;  %s436_s0 = inlined_call_operand.vmem [shape: bf16[16,32], index: 0, kind: input, shape index: {}]   ;;  %s437_s1 = inlined_call_operand.vmem [shape: bf16[32,64], index: 1, kind: input, shape index: {}]   ;;  %s438_s2 = inlined_call_operand.vmem [shape: f32[1,64], index: 2, kind: input, shape index: {}]   ;;  %s439_s3 = inlined_call_operand.vmem [shape: bf16[64,32], index: 3, kind: input, shape index: {}]   ;;  %s440_s4 = inlined_call_operand.vmem [shape: f32[1,32], index: 4, kind: input, shape index: {}]   ;;  %s441_s5 = inlined_call_operand.vmem [shape: f32[1,32], index: 5, kind: input, shape index: {}]   ;;  %s442_s6 = inlined_call_operand.vmem [shape: f32[1,32], index: 6, kind: input, shape index: {}]   ;;  %s443_s7 = inlined_call_operand.hbm [shape: f32[16,32], index: 7, kind: output, shape index: {}]  }
   0x1   :  { %v303_v0 = vld [vmem:[%s437_s1] sm:$0xff]   ;;  %278 = vmatprep.subr.bf16.mxu0 %v339_v1  ;;  %v304_v2 = vld [vmem:[%s437_s1 + $0x8] sm:$0xff]   ;;  %286 = vmatprep.subr.bf16.mxu1 %v339_v1 }
   0x2   :  { %279 = vmatpush3.bf16.msra.mxu0 %v303_v0  ;;  %282 = vmatprep.mubr.msk.bf16.mxu0 %vm340_vm0, %v339_v1  ;;  %v28_v3 = vld [vmem:[%s436_s0] sm:$0xff]   ;;  %v307_v5 = vld [vmem:[%s439_s3 + $0x8] sm:$0xff]  }
   0x3   :  { %280 = vmatprep.subr.bf16.mxu0 %v339_v1  ;;  %v306_v4 = vld [vmem:[%s439_s3] sm:$0xff]   ;;  %294 = vmatprep.mubr.msk.bf16.mxu1 %vm340_vm0, %v339_v1 }
   0x4   :  { %287 = vmatpush3.bf16.msra.mxu1 %v306_v4 }
   0x5   :  { %288 = vmatprep.subr.bf16.mxu1 %v339_v1 }
   0x6   :  { %281 = vmatpush3.bf16.msra.mxu0 %v304_v2 }
   0x7   :  { %12 = vsyncpa [#allocation3], 0  ;;  %v308_v6 = vld [vmem:[%s439_s3 + $0x10] sm:$0xff]   ;;  %v309_v7 = vld [vmem:[%s439_s3 + $0x18] sm:$0xff]   ;;  %vm147_vm2 = vcmask 523264   ;;  %v30_v19 = vunpack.c.l.bf16 %v28_v3  ;;  %v31_v23 = vunpack.c.h.bf16 %v28_v3  ;;  %s341_s18 = smov [#allocation2]  }
   0x8   :  { %289 = vmatpush3.bf16.msra.mxu1 %v307_v5  ;;  %v257_v8 = vld [vmem:[%s438_s2] ss:$0 sm:$0xff]  ;;  %s246_s19 = sshll.u32 %s341_s18, 4  ;;  %s247_s19 = int_to_ptr.vmem [resolvable:$true] %s246_s19 }
   0x9   :  { %283 = vmatmul.mubr.msk.bf16.vlgmr.msra.gmra.mrb[0].mxu0 %vm60_vm1, %v28_v3  ;;  %290 = vmatprep.subr.bf16.mxu1 %v339_v1  ;;  %v262_v18 = vld [vmem:[%s440_s4] ss:$0 sm:$0xff]  ;;  %s315_s20 = scalar_lea.vmem %s247_s19, 256  ;;  %p320_p1 = scmp.lt.s32.totalorder %s247_s19, %s247_s19 }
   0xa   :  { %v268_v48 = vld [vmem:[%s441_s5] ss:$0 sm:$0xff]  ;;  %p316_p0 = scmp.ne.s32.totalorder %s247_s19, %s315_s20  ;;  %p321_p2 = scmp.lt.s32.totalorder %s315_s20, %s315_s20 }
   0xb   :  { %v269_v50 = vld [vmem:[%s442_s6] ss:$0 sm:$0xff] }
   0xc   :  { %291 = vmatpush3.bf16.msra.mxu1 %v308_v6  ;;  %p322_p3 = por %p321_p2, %p320_p1 }
   0xd   :  { %292 = vmatprep.subr.bf16.mxu1 %v339_v1 }
   0xe   :  { %p323_p4 = pnand %p322_p3, %p316_p0 }
  0x10   :  { %293 = vmatpush3.bf16.msra.mxu1 %v309_v7 }
  0xdc   :  { %v98_v9 = vpop.f32.mrb[0].mxu0 }
  0xdd   :  { %v99_v10 = vadd.f32 %v257_v8, %v98_v9  ;;  %v284_v11 = vpop.f32.mrb[1].mxu0 }
  0xde   :  { %v101_v12 = vpop.f32.mrb[2].mxu0 }
  0xdf   :  { %v102_v13 = vadd.f32 %v257_v8, %v101_v12  ;;  %v285_v14 = vpop.f32.mrb[3].mxu0  ;;  %v105_v15 = vmax.f32 %v99_v10, 0.0 }
  0xe1   :  { %v106_v16 = vmax.f32 %v102_v13, 0.0 }
  0xe3   :  { %v107_v17 = vpack.c.bf16 %v106_v16, %v105_v15 }
  0xe5   :  { %295 = vmatmul.mubr.msk.bf16.vlgmr.msra.gmra.mrb[0].mxu1 %vm147_vm2, %v107_v17 }
 0x1b8   :  { %v185_v20 = vpop.f32.mrb[0].mxu1 }
 0x1b9   :  { %v186_v21 = vadd.f32 %v262_v18, %v185_v20  ;;  %v296_v22 = vpop.f32.mrb[1].mxu1 }
 0x1ba   :  { %v188_v24 = vpop.f32.mrb[2].mxu1 }
 0x1bb   :  { %v189_v25 = vadd.f32 %v262_v18, %v188_v24  ;;  %v297_v26 = vpop.f32.mrb[3].mxu1  ;;  %v192_v27 = vadd.f32 %v186_v21, %v30_v19 }
 0x1bd   :  { %v196_v28 = vsel %vm60_vm1, %v192_v27, 0.0  ;;  %v193_v29 = vadd.f32 %v189_v25, %v31_v23 }
 0x1be   :  { %197 = vadd.xlane.f32.xlu0 %v196_v28 }
 0x1bf   :  { %v199_v30 = vsel %vm60_vm1, %v193_v29, 0.0 }
 0x1c2   :  { %200 = vadd.xlane.f32.xlu0 %v199_v30 }
 0x24b   :  { %v198_v31 = vpop.xlane.xlu0 %197 }
 0x24c   :  { %v203_v32 = vmul.f32 0.03125, %v198_v31 }
 0x24e   :  { %v205_v33 = vsub.f32 %v192_v27, %v203_v32 }
 0x24f   :  { %v201_v34 = vpop.xlane.xlu0 %200 }
 0x250   :  { %v204_v35 = vmul.f32 0.03125, %v201_v34  ;;  %v207_v36 = vmul.f32 %v205_v33, %v205_v33 }
 0x252   :  { %v206_v37 = vsub.f32 %v193_v29, %v204_v35  ;;  %v209_v38 = vsel %vm60_vm1, %v207_v36, 0.0 }
 0x253   :  { %210 = vadd.xlane.f32.xlu1 %v209_v38 }
 0x254   :  { %v208_v39 = vmul.f32 %v206_v37, %v206_v37 }
 0x256   :  { %v212_v40 = vsel %vm60_vm1, %v208_v39, 0.0 }
 0x257   :  { %213 = vadd.xlane.f32.xlu1 %v212_v40 }
 0x2e0   :  { %v211_v41 = vpop.xlane.xlu1 %210 }
 0x2e1   :  { %v215_v42 = vmul.f32 0.03125, %v211_v41 }
 0x2e3   :  { %v217_v43 = vadd.f32 1e-05, %v215_v42 }
 0x2e4   :  { %v214_v44 = vpop.xlane.xlu1 %213 }
 0x2e5   :  { %311 = vrsqrt.f32 %v217_v43  ;;  %v216_v45 = vmul.f32 0.03125, %v214_v44 }
 0x2e7   :  { %v218_v46 = vadd.f32 1e-05, %v216_v45 }
 0x2e9   :  { %313 = vrsqrt.f32 %v218_v46 }
 0x2ef   :  { %v312_v47 = vpop.eup %311 }
 0x2f0   :  { %v221_v49 = vmul.f32 %v312_v47, %v205_v33 }
 0x2f2   :  { %v229_v51 = vmul.f32 %v268_v48, %v221_v49 }
 0x2f3   :  { %v314_v52 = vpop.eup %313 }
 0x2f4   :  { %v222_v53 = vmul.f32 %v314_v52, %v206_v37  ;;  %v237_v54 = vadd.f32 %v269_v50, %v229_v51 }
 0x2f6   :  { %v230_v55 = vmul.f32 %v268_v48, %v222_v53  ;;  %239 = vst.msk [vmem:[#allocation2] sm:$0xff] %vm60_vm1, %v237_v54 }
 0x2f8   :  { %v238_v56 = vadd.f32 %v269_v50, %v230_v55 }
 0x2fa   :  { %240 = vst.msk [vmem:[#allocation2 + $0x8] sm:$0xff] %vm60_vm1, %v238_v56 }
 0x2fb   :  { %326 = shalt.err (!%p323_p4)
}
 0x2fc   :  { %s327_s21 = scalar_lea.hbm %s443_s7, 256 }
 0x2fd   :  { %p328_p5 = scmp.ne.s32.totalorder %s443_s7, %s327_s21  ;;  %p331_p6 = scmp.lt.u32.totalorder %s327_s21, %s443_s7 }
 0x2ff   :  { %p333_p7 = pnand %p331_p6, %p328_p5 }
 0x301   :  { %336 = shalt.err (!%p333_p7)
}
 0x302   :  { %s342_s26 = smov 128   ;;  %s343_s27 = smov 8  }
 0x303   :  { %252 = dma.vmem_to_hbm [thread:$0]  %s247_s19, 256, %s443_s7, [#allocation3], %s342_s26, %s342_s26, %s343_s27  }
 0x304   :  { %337 = dma.done.wait [#allocation3], 256  }
 0x305   :  { %338 = vsyncadd [#allocation3], 4294967040 }
 0x306   :  { %256 = vsyncpa [#allocation3], 1 }

// kernel: base_transformer_layer_forward.3
= control target key start
LH: loop header
LB: loop body
LE: loop exit
PB: predicated region body
PF: predicated region fallthrough
CT: control target
= control target key end

     0   :  { %13 = vsyncpa [#allocation3], 0  ;;  %s2278_s0 = inlined_call_operand.vmem [shape: f32[2,8,32], index: 0, kind: input, shape index: {}]   ;;  %s2279_s1 = inlined_call_operand.vmem [shape: f32[2,8,32], index: 1, kind: input, shape index: {}]   ;;  %s2280_s2 = inlined_call_operand.hbm [shape: bf16[32,96], index: 2, kind: input, shape index: {}]   ;;  %s2281_s3 = inlined_call_operand.hbm [shape: f32[1,96], index: 3, kind: input, shape index: {}]   ;;  %s2282_s4 = inlined_call_operand.hbm [shape: bf16[4,8,32], index: 4, kind: input, shape index: {}]   ;;  %s2283_s5 = inlined_call_operand.hbm [shape: f32[1,32], index: 5, kind: input, shape index: {}]   ;;  %s2284_s6 = inlined_call_operand.hbm [shape: f32[1,32], index: 6, kind: input, shape index: {}]   ;;  %s2285_s7 = inlined_call_operand.hbm [shape: f32[1,32], index: 7, kind: input, shape index: {}]   ;;  %s2286_s8 = inlined_call_operand.vmem [shape: bf16[2,8,32], index: 8, kind: output, shape index: {}]  }
   0x1   :  { %14 = vsyncpa [#allocation5], 0 }
   0x2   :  { %15 = vsyncpa [#allocation8], 0 }
   0x3   :  { %16 = vsyncpa [#allocation11], 0  ;;  %s1956_s27 = smov 0   ;;  %s1958_s28 = smov 0  }
   0x4   :  { %s1960_s29 = smov 0  }
   0x5 LB: > { %s1896_s30 = smov [#allocation4]   ;;  %s1414_s10 = sadd.s32 4294967295, %s1894_s29   ;;  %s1894_s29 = sphi %s1960_s29, %s22_s29   ;;  %s1890_s28 = sphi %s1958_s28, %s2299_s28   ;;  %s1886_s27 = sphi %s1956_s27, %s2298_s27  }
   0x6   : > { %s275_s9 = sshll.u32 %s1896_s30, 4  ;;  %p1416_p0 = scmp.ge.s32.totalorder %s1894_s29, 1  ;;  %s276_s9 = int_to_ptr.vmem [resolvable:$true] %s275_s9 }
   0x7   : > { %p249_p1 = scmp.lt.s32.totalorder %s1894_s29, 3  ;;  %p1974_p2 = scmp.eq.s32.totalorder %s1414_s10, 0 }
   0x8   : > { %s1897_s13 = smov [#allocation7]   ;;  %s34_s16 = sadd.s32 1, %s1890_s28 }
   0x9   : > { %s2290_s11 = scalar_select %p1974_p2, 1, 0 }
   0xa   : > { %p1978_p3 = pnand %p1416_p0, %p249_p1  ;;  %s299_s14 = sshll.u32 %s1897_s13, 4  ;;  %s1984_s14 = int_to_ptr.vmem [resolvable:$true] %s299_s14 }
   0xb   : > { %p1995_p6 = scmp.ge.s32.totalorder %s34_s16, 2  ;;  %s1688_s20 = scalar_lea.hbm %s2281_s3, 16 }
   0xc   : > { %s2291_s12 = scalar_select %p1978_p3, 1, 0 }
   0xd   : > { %p1598_p4 = pneg %p1978_p3  ;;  %p1689_p7 = scmp.ne.s32.totalorder %s2281_s3, %s1688_s20 }
   0xe   : > { %s2293_s17 = scalar_select %p1995_p6, 1, 0 }
   0xf   : > { %p1988_p5 = pnand %p1974_p2, %p1598_p4  ;;  %p1695_p11 = scmp.lt.u32.totalorder %s1688_s20, %s2281_s3 }
  0x11   : > { %p2007_p8 = pneg %p1988_p5 }
  0x13   : > { %p1691_p9 = pnand %p2007_p8, %p1689_p7 }
  0x15   : > { %p1692_p10 = pneg %p1691_p9 }
  0x17   : > { %p1697_p12 = pnand %p1695_p11, %p1692_p10 }
  0x19   : > { %1700 = shalt.err (!%p1697_p12)
}
  0x1a   : > { %s1701_s26 = scalar_lea.vmem %s276_s9, 16  ;;  %s1708_s30 = scalar_lea.vmem %s276_s9, 32 }
  0x1b   : > { %p1702_p13 = scmp.ne.s32.totalorder %s276_s9, %s1701_s26  ;;  %p1709_p4 = scmp.lt.s32.totalorder %s276_s9, %s276_s9 }
  0x1c   : > { %p1710_p2 = scmp.lt.s32.totalorder %s1708_s30, %s1701_s26 }
  0x1d   : > { %p1704_p0 = pnand %p1702_p13, %p2007_p8 }
  0x1e   : > { %p1711_p3 = por %p1710_p2, %p1709_p4 }
  0x1f   : > { %p1705_p1 = pneg %p1704_p0 }
  0x21   : > { %p1712_p6 = pnand %p1711_p3, %p1705_p1 }
  0x23   : > { %1715 = shalt.err (!%p1712_p6)
}
  0x24   : > { %1604 = dma.hbm_to_vmem [thread:$0]  (!%p1988_p5), %s2281_s3, 16, %s276_s9, [#allocation5]  }
  0x25   : > { %s1716_s20 = scalar_lea.hbm %s2283_s5, 16 }
  0x26   : > { %p1717_p7 = scmp.ne.s32.totalorder %s2283_s5, %s1716_s20  ;;  %p1723_p3 = scmp.lt.u32.totalorder %s1716_s20, %s2283_s5 }
  0x28   : > { %p1719_p9 = pnand %p1717_p7, %p2007_p8 }
  0x2a   : > { %p1720_p2 = pneg %p1719_p9 }
  0x2c   : > { %p1725_p6 = pnand %p1723_p3, %p1720_p2 }
  0x2e   : > { %1728 = shalt.err (!%p1725_p6)
}
  0x2f   : > { %s1729_s9 = scalar_lea.vmem %s1984_s14, 16  ;;  %s1736_s26 = scalar_lea.vmem %s1984_s14, 32 }
  0x30   : > { %p1730_p10 = scmp.ne.s32.totalorder %s1984_s14, %s1729_s9  ;;  %p1737_p13 = scmp.lt.s32.totalorder %s1984_s14, %s1984_s14 }
  0x31   : > { %p1738_p0 = scmp.lt.s32.totalorder %s1736_s26, %s1729_s9 }
  0x32   : > { %p1732_p11 = pnand %p1730_p10, %p2007_p8 }
  0x33   : > { %p1739_p1 = por %p1738_p0, %p1737_p13 }
  0x34   : > { %p1733_p12 = pneg %p1732_p11 }
  0x36   : > { %p1740_p4 = pnand %p1739_p1, %p1733_p12 }
  0x38   : > { %1743 = shalt.err (!%p1740_p4)
}
  0x39   : > { %1610 = dma.hbm_to_vmem [thread:$0]  (!%p1988_p5), %s2283_s5, 16, %s1984_s14, [#allocation8]  }
  0x3a   : > { %p2295_p7 = scmp.ne.s32.totalorder %s2293_s17, 0  ;;  %s1898_s13 = smov [#allocation2]  }
  0x3b   : > { %s261_s18 = sshll.u32 %s1898_s13, 4  ;;  %s1744_s21 = scalar_lea.hbm %s2280_s2, 256  ;;  %s262_s18 = int_to_ptr.vmem [resolvable:$true] %s261_s18 }
  0x3c   : > { %s2301_s16 = smov (%p2295_p7, %s34_s16), 0  ;;  %p1745_p9 = scmp.ne.s32.totalorder %s2280_s2, %s1744_s21 }
  0x3d   : > { %p1751_p6 = scmp.lt.u32.totalorder %s1744_s21, %s2280_s2 }
  0x3e   : > { %p1747_p2 = pnand %p1745_p9, %p2007_p8 }
  0x40   : > { %p1748_p3 = pneg %p1747_p2 }
  0x42   : > { %p1753_p10 = pnand %p1751_p6, %p1748_p3 }
  0x44   : > { %1756 = shalt.err (!%p1753_p10)
}
  0x45   : > { %s1757_s17 = scalar_lea.vmem %s262_s18, 256  ;;  %p1765_p0 = scmp.lt.s32.totalorder %s262_s18, %s262_s18 }
  0x46   : > { %p1758_p11 = scmp.ne.s32.totalorder %s262_s18, %s1757_s17  ;;  %p1766_p1 = scmp.lt.s32.totalorder %s1757_s17, %s1757_s17 }
  0x48   : > { %p1760_p12 = pnand %p1758_p11, %p2007_p8  ;;  %p1767_p4 = por %p1766_p1, %p1765_p0 }
  0x4a   : > { %p1761_p13 = pneg %p1760_p12 }
  0x4c   : > { %p1768_p7 = pnand %p1767_p4, %p1761_p13 }
  0x4e   : > { %1771 = shalt.err (!%p1768_p7)
}
  0x4f   : > { %s1899_s9 = smov 64   ;;  %s1900_s26 = smov 4  }
  0x50   : > { %1601 = dma.hbm_to_vmem [thread:$0]  (!%p1988_p5), %s2280_s2, 256, %s262_s18, [#allocation3], %s1899_s9, %s1899_s9, %s1900_s26  }
  0x51   : > { %s1901_s13 = smov [#allocation6]   ;;  %s1902_s20 = smov [#allocation9]  }
  0x52   : > { %s285_s19 = sshll.u32 %s1901_s13, 4  ;;  %s310_s21 = sshll.u32 %s1902_s20, 4  ;;  %s286_s19 = int_to_ptr.vmem [resolvable:$true] %s285_s19  ;;  %s2071_s21 = int_to_ptr.vmem [resolvable:$true] %s310_s21 }
  0x53   : > { %s1772_s25 = scalar_lea.hbm %s2282_s4, 256 }
  0x54   : > { %p1773_p9 = scmp.ne.s32.totalorder %s2282_s4, %s1772_s25  ;;  %p1779_p6 = scmp.lt.u32.totalorder %s1772_s25, %s2282_s4 }
  0x56   : > { %p1775_p2 = pnand %p1773_p9, %p2007_p8 }
  0x58   : > { %p1776_p3 = pneg %p1775_p2 }
  0x5a   : > { %p1781_p10 = pnand %p1779_p6, %p1776_p3 }
  0x5c   : > { %1784 = shalt.err (!%p1781_p10)
}
  0x5d   : > { %s1785_s10 = scalar_lea.vmem %s286_s19, 256  ;;  %p1793_p0 = scmp.lt.s32.totalorder %s286_s19, %s286_s19 }
  0x5e   : > { %p1786_p11 = scmp.ne.s32.totalorder %s286_s19, %s1785_s10  ;;  %p1794_p1 = scmp.lt.s32.totalorder %s1785_s10, %s1785_s10 }
  0x60   : > { %p1788_p12 = pnand %p1786_p11, %p2007_p8  ;;  %p1795_p4 = por %p1794_p1, %p1793_p0 }
  0x62   : > { %p1789_p13 = pneg %p1788_p12 }
  0x64   : > { %p1796_p7 = pnand %p1795_p4, %p1789_p13 }
  0x66   : > { %1799 = shalt.err (!%p1796_p7)
}
  0x67   : > { %1607 = dma.hbm_to_vmem [thread:$0]  (!%p1988_p5), %s2282_s4, 256, %s286_s19, [#allocation5], %s1899_s9, %s1899_s9, %s1900_s26  }
  0x68   : > { %s1800_s25 = scalar_lea.hbm %s2284_s6, 16 }
  0x69   : > { %p1801_p9 = scmp.ne.s32.totalorder %s2284_s6, %s1800_s25  ;;  %p1807_p6 = scmp.lt.u32.totalorder %s1800_s25, %s2284_s6 }
  0x6b   : > { %p1803_p2 = pnand %p1801_p9, %p2007_p8 }
  0x6d   : > { %p1804_p3 = pneg %p1803_p2 }
  0x6f   : > { %p1809_p10 = pnand %p1807_p6, %p1804_p3 }
  0x71   : > { %1812 = shalt.err (!%p1809_p10)
}
  0x72   : > { %s1813_s9 = scalar_lea.vmem %s2071_s21, 16  ;;  %s1820_s26 = scalar_lea.vmem %s2071_s21, 32 }
  0x73   : > { %p1814_p11 = scmp.ne.s32.totalorder %s2071_s21, %s1813_s9  ;;  %p1821_p0 = scmp.lt.s32.totalorder %s2071_s21, %s2071_s21 }
  0x74   : > { %p1822_p1 = scmp.lt.s32.totalorder %s1820_s26, %s1813_s9 }
  0x75   : > { %p1816_p12 = pnand %p1814_p11, %p2007_p8 }
  0x76   : > { %p1823_p4 = por %p1822_p1, %p1821_p0 }
  0x77   : > { %p1817_p13 = pneg %p1816_p12 }
  0x79   : > { %p1824_p7 = pnand %p1823_p4, %p1817_p13 }
  0x7b   : > { %1827 = shalt.err (!%p1824_p7)
}
  0x7c   : > { %1613 = dma.hbm_to_vmem [thread:$0]  (!%p1988_p5), %s2284_s6, 16, %s2071_s21, [#allocation8]  }
  0x7d   : > { %s1903_s13 = smov [#allocation10]   ;;  %s1828_s25 = scalar_lea.hbm %s2285_s7, 16 }
  0x7e   : > { %s321_s20 = sshll.u32 %s1903_s13, 4  ;;  %p1829_p9 = scmp.ne.s32.totalorder %s2285_s7, %s1828_s25  ;;  %s322_s20 = int_to_ptr.vmem [resolvable:$true] %s321_s20 }
  0x7f   : > { %p1835_p6 = scmp.lt.u32.totalorder %s1828_s25, %s2285_s7 }
  0x80   : > { %p1831_p2 = pnand %p1829_p9, %p2007_p8 }
  0x82   : > { %p1832_p3 = pneg %p1831_p2 }
  0x84   : > { %p1837_p10 = pnand %p1835_p6, %p1832_p3 }
  0x86   : > { %1840 = shalt.err (!%p1837_p10)
}
  0x87   : > { %s1841_s21 = scalar_lea.vmem %s322_s20, 16  ;;  %s1848_s9 = scalar_lea.vmem %s322_s20, 32 }
  0x88   : > { %p1842_p11 = scmp.ne.s32.totalorder %s322_s20, %s1841_s21  ;;  %p1849_p0 = scmp.lt.s32.totalorder %s322_s20, %s322_s20 }
  0x89   : > { %p1850_p1 = scmp.lt.s32.totalorder %s1848_s9, %s1841_s21 }
  0x8a   : > { %p1844_p12 = pnand %p1842_p11, %p2007_p8 }
  0x8b   : > { %p1851_p4 = por %p1850_p1, %p1849_p0 }
  0x8c   : > { %p1845_p13 = pneg %p1844_p12 }
  0x8e   : > { %p1852_p7 = pnand %p1851_p4, %p1845_p13 }
  0x90   : > { %1855 = shalt.err (!%p1852_p7)
}
  0x91   : > { %1616 = dma.hbm_to_vmem [thread:$0]  (!%p1988_p5), %s2285_s7, 16, %s322_s20, [#allocation11]  }
  0x92   : > { %p2296_p9 = scmp.ne.s32.totalorder %s2291_s12, 0 }
  0x93   : > { %p2297_p2 = scmp.ne.s32.totalorder (!%p2296_p9), %s2290_s11, 0 }
  0x94   : > { %354 = sbr.rel (%p2296_p9) target bundleno = 1915 (0x77b), region = 52 }
  0x9b   : > { %1869 = dma.done.wait (%p2297_p2), [#allocation3], 256  }
  0x9c   : > { %1871 = vsyncadd (%p2297_p2), [#allocation3], 4294967040 }
  0x9d   : > { %1873 = dma.done.wait (%p2297_p2), [#allocation5], 272  }
  0x9e   : > { %1875 = vsyncadd (%p2297_p2), [#allocation5], 4294967024 }
  0x9f   : > { %1877 = dma.done.wait (%p2297_p2), [#allocation8], 32  }
  0xa0   : > { %1879 = vsyncadd (%p2297_p2), [#allocation8], 4294967264 }
  0xa1   : > { %1881 = dma.done.wait (%p2297_p2), [#allocation11], 16  }
  0xa2   : > { %1883 = vsyncadd (%p2297_p2), [#allocation11], 4294967280  ;;  %p419_p5 = scmp.lt.s32.totalorder %s1886_s27, 1  ;;  %v1904_v0 = vmov 0.0   ;;  %vm1905_vm0 = vmmov 0   ;;  %v1668_v1 = vld [vmem:[#allocation2] sm:$0xff]  }
  0xa3   : > { %1486 = vmatprep.subr.bf16.mxu0 %v1904_v0  ;;  %1490 = vmatprep.mubr.msk.bf16.mxu0 %vm1905_vm0, %v1904_v0  ;;  %v1669_v2 = vld [vmem:[#allocation2 + $0x8] sm:$0xff]   ;;  %vm468_vm1 = vcmask 261120   ;;  %v2176_v7 = vld [vmem:[#allocation4] ss:$0 sm:$0xff]  ;;  %s1906_s22 = smov 104   ;;  %s1907_s24 = smov 120  }
  0xa4   : > { %s2303_s27 = smov (!%p419_p5, %s1886_s27), 1  ;;  %1494 = vmatprep.subr.bf16.mxu1 %v1904_v0  ;;  %1498 = vmatprep.mubr.msk.bf16.mxu1 %vm1905_vm0, %v1904_v0  ;;  %s1908_s25 = smov 64   ;;  %vm596_vm2 = vcmask 64512   ;;  %vm841_vm3 = vcmask 1043456   ;;  %vm1262_vm4 = vcmask 257024  }
  0xa5   : > { %s1431_s11 = sshll.u32 %s2303_s27, 3  ;;  %1487 = vmatpush3.bf16.msra.mxu0 %v1668_v1  ;;  %s1909_s14 = smov 112  }
  0xa6   : > { %s425_s23 = scalar_lea.vmem %s2278_s0, %s1431_s11  ;;  %s432_s20 = scalar_lea.vmem %s2279_s1, %s1431_s11  ;;  %1488 = vmatprep.subr.bf16.mxu0 %v1904_v0 }
  0xa7   : > { %v2168_v3 = vld [vmem:[%s425_s23] sm:$0xff]  ;;  %s1910_s17 = smov 96   ;;  %s1433_s30 = sshll.u32 %s2303_s27, 2 }
  0xa8   : > { %v442_v4 = vld [vmem:[%s432_s20] sm:$0xff]  ;;  %v512_v23 = vpack.c.bf16 %v2168_v3, %v2168_v3  ;;  %s439_s9 = scalar_lea.vmem %s2286_s8, %s1433_s30 }
  0xa9   : > { %v443_v5 = vadd.f32 %v442_v4, %v2168_v3  ;;  %1489 = vmatpush3.bf16.msra.mxu0 %v1669_v2 }
  0xaa   : > { %1502 = vmatprep.subr.bf16.mxu0 %v1904_v0 }
  0xab   : > { %v449_v6 = vpack.c.bf16 %v443_v5, %v443_v5 }
  0xad   : > { %1491 = vmatmul.mubr.msk.bf16.vlgmr.msra.gmra.mrb[0].mxu0 %vm468_vm1, %v449_v6 }
  0xae   : > { %1504 = vmatprep.mubr.msk.bf16.mxu0 %vm1905_vm0, %v1904_v0 }
 0x180   : > { %v506_v8 = vpop.f32.mrb[0].mxu0 }
 0x181   : > { %v507_v9 = vadd.f32 %v2176_v7, %v506_v8  ;;  %v1492_v10 = vpop.f32.mrb[1].mxu0 }
 0x182   : > { %v509_v11 = vpop.f32.mrb[2].mxu0 }
 0x183   : > { %572 = vrot.lane.b32.xlu1 %v507_v9, %s1906_s22  ;;  %566 = vrot.lane.b32.xlu0 %v507_v9, %s1907_s24  ;;  %v1493_v12 = vpop.f32.mrb[3].mxu0  ;;  %v575_v13 = vpack.c.bf16 %v507_v9, %v507_v9 }
 0x187   : > { %513 = vrot.lane.b32.xlu1 %v1668_v1, %s1908_s25  ;;  %569 = vrot.lane.b32.xlu0 %v507_v9, %s1909_s14 }
 0x18b   : > { %594 = vrot.lane.b32.xlu1 %v575_v13, %s1910_s17  ;;  %515 = vrot.lane.b32.xlu0 %v1669_v2, %s1908_s25 }
 0x1f5   : > { %v573_v14 = vpop.permute.xlu1 %572  ;;  %v567_v15 = vpop.permute.xlu0 %566 }
 0x1f6   : > { %v576_v16 = vpack.c.bf16 %v567_v15, %v567_v15  ;;  %v578_v19 = vpack.c.bf16 %v573_v14, %v573_v14 }
 0x1f8   : > { %644 = vrot.lane.b32.xlu0 %v576_v16, %s1910_s17 }
 0x1f9   : > { %v514_v17 = vpop.permute.xlu1 %513  ;;  %v570_v18 = vpop.permute.xlu0 %569 }
 0x1fa   : > { %v577_v20 = vpack.c.bf16 %v570_v18, %v570_v18  ;;  %1495 = vmatpush3.bf16.msra.mxu1 %v514_v17 }
 0x1fb   : > { %1496 = vmatprep.subr.bf16.mxu1 %v1904_v0 }
 0x1fc   : > { %742 = vrot.lane.b32.xlu0 %v578_v19, %s1910_s17  ;;  %693 = vrot.lane.b32.xlu1 %v577_v20, %s1910_s17 }
 0x1fd   : > { %v595_v21 = vpop.permute.xlu1 %594  ;;  %v516_v22 = vpop.permute.xlu0 %515 }
 0x1fe   : > { %v601_v24 = vsel %vm596_vm2, %v595_v21, 0  ;;  %1497 = vmatpush3.bf16.msra.mxu1 %v516_v22 }
 0x1ff   : > { %1503 = vmatpush3.bf16.xpose.msra.mxu0 %v601_v24  ;;  %1508 = vmatprep.subr.bf16.mxu1 %v1904_v0 }
 0x200   : > { %1514 = vmatprep.subr.bf16.mxu0 %v1904_v0 }
 0x201   : > { %1499 = vmatmul.mubr.msk.bf16.vlgmr.msra.gmra.mrb[0].mxu1 %vm468_vm1, %v512_v23 }
 0x202   : > { %1510 = vmatprep.mubr.msk.bf16.mxu1 %vm1905_vm0, %v1904_v0 }
 0x206   : > { %1505 = vmatmul.mubr.msk.bf16.vlgmr.msra.gmra.mrb[4].mxu0 %vm596_vm2, %v575_v13 }
 0x207   : > { %1516 = vmatprep.mubr.msk.bf16.mxu0 %vm1905_vm0, %v1904_v0 }
 0x26a   : > { %v645_v25 = vpop.permute.xlu0 %644 }
 0x26b   : > { %v650_v26 = vsel %vm596_vm2, %v645_v25, 0 }
 0x26c   : > { %1509 = vmatpush3.bf16.xpose.msra.mxu1 %v650_v26 }
 0x26d   : > { %1520 = vmatprep.subr.bf16.mxu1 %v1904_v0 }
 0x26e   : > { %v694_v27 = vpop.permute.xlu1 %693  ;;  %v743_v29 = vpop.permute.xlu0 %742 }
 0x26f   : > { %v699_v28 = vsel %vm596_vm2, %v694_v27, 0  ;;  %v748_v30 = vsel %vm596_vm2, %v743_v29, 0 }
 0x270   : > { %1515 = vmatpush3.bf16.xpose.msra.mxu0 %v699_v28 }
 0x271   : > { %1526 = vmatprep.subr.bf16.mxu0 %v1904_v0 }
 0x273   : > { %1511 = vmatmul.mubr.msk.bf16.vlgmr.msra.gmra.mrb[4].mxu1 %vm596_vm2, %v576_v16 }
 0x274   : > { %1521 = vmatpush3.bf16.xpose.msra.mxu1 %v748_v30  ;;  %1522 = vmatprep.mubr.msk.bf16.mxu1 %vm1905_vm0, %v1904_v0 }
 0x275   : > { %1532 = vmatprep.subr.bf16.mxu1 %v1904_v0 }
 0x277   : > { %1517 = vmatmul.mubr.msk.bf16.vlgmr.msra.gmra.mrb[8].mxu0 %vm596_vm2, %v577_v20 }
 0x278   : > { %1528 = vmatprep.mubr.msk.bf16.mxu0 %vm1905_vm0, %v1904_v0 }
 0x27b   : > { %1523 = vmatmul.mubr.msk.bf16.vlgmr.msra.gmra.mrb[8].mxu1 %vm596_vm2, %v578_v19 }
 0x27c   : > { %1534 = vmatprep.mubr.msk.bf16.mxu1 %vm1905_vm0, %v1904_v0 }
 0x2d4   : > { %v559_v31 = vpop.f32.mrb[0].mxu1 }
 0x2d5   : > { %v1500_v32 = vpop.f32.mrb[1].mxu1 }
 0x2d6   : > { %v562_v33 = vpop.f32.mrb[2].mxu1 }
 0x2d7   : > { %v1501_v34 = vpop.f32.mrb[3].mxu1 }
 0x2d9   : > { %v637_v35 = vpop.f32.mrb[4].mxu0 }
 0x2da   : > { %v1506_v36 = vpop.f32.mrb[5].mxu0  ;;  %v790_v37 = vsel %vm596_vm2, %v637_v35, -inf }
 0x2db   : > { %791 = vmax.xlane.f32.xlu1 %v790_v37  ;;  %v640_v38 = vpop.f32.mrb[6].mxu0 }
 0x2dc   : > { %v1507_v39 = vpop.f32.mrb[7].mxu0 }
 0x346   : > { %v686_v40 = vpop.f32.mrb[4].mxu1 }
 0x347   : > { %v1512_v41 = vpop.f32.mrb[5].mxu1  ;;  %v793_v42 = vsel %vm596_vm2, %v686_v40, -inf }
 0x348   : > { %794 = vmax.xlane.f32.xlu0 %v793_v42  ;;  %v689_v43 = vpop.f32.mrb[6].mxu1 }
 0x349   : > { %v1513_v44 = vpop.f32.mrb[7].mxu1 }
 0x34a   : > { %v735_v45 = vpop.f32.mrb[8].mxu0  ;;  %v1028_v44 = vld [vmem:[#allocation6 + $0x4] sm:$0xf] }
 0x34b   : > { %v1518_v46 = vpop.f32.mrb[9].mxu0  ;;  %v796_v47 = vsel %vm596_vm2, %v735_v45, -inf }
 0x34c   : > { %797 = vmax.xlane.f32.xlu0 %v796_v47  ;;  %v738_v48 = vpop.f32.mrb[10].mxu0  ;;  %v1029_v46 = vld [vmem:[#allocation6 + $0x8] sm:$0xf] }
 0x34d   : > { %v1519_v49 = vpop.f32.mrb[11].mxu0 }
 0x34e   : > { %v784_v50 = vpop.f32.mrb[8].mxu1 }
 0x34f   : > { %v1524_v51 = vpop.f32.mrb[9].mxu1  ;;  %v799_v52 = vsel %vm596_vm2, %v784_v50, -inf }
 0x350   : > { %v787_v53 = vpop.f32.mrb[10].mxu1  ;;  %800 = vmax.xlane.f32.xlu1 %v799_v52 }
 0x351   : > { %v1525_v54 = vpop.f32.mrb[11].mxu1  ;;  %v1030_v53 = vld [vmem:[#allocation6 + $0xc] sm:$0xf] }
 0x362   : > { %519 = vrot.lane.b32.xlu0 %v2176_v7, %s1908_s25 }
 0x368   : > { %v792_v55 = vpop.xlane.xlu1 %791 }
 0x369   : > { %v802_v56 = vsub.f32 %v637_v35, %v792_v55  ;;  %v1027_v35 = vld [vmem:[#allocation6] sm:$0xf] }
 0x36a   : > { %v1035_v39 = vsel %vm841_vm3, %v1027_v35, 0 }
 0x36b   : > { %v806_v57 = vmul.f32 1.442695, %v802_v56 }
 0x36d   : > { %1670 = vpow2.f32 %v806_v57 }
 0x377   : > { %v1671_v58 = vpop.eup %1670 }
 0x378   : > { %v814_v59 = vsel %vm596_vm2, %v1671_v58, 0.0 }
 0x379   : > { %815 = vadd.xlane.f32.xlu1 %v814_v59 }
 0x3d5   : > { %v795_v60 = vpop.xlane.xlu0 %794 }
 0x3d6   : > { %v803_v61 = vsub.f32 %v686_v40, %v795_v60 }
 0x3d8   : > { %v808_v62 = vmul.f32 1.442695, %v803_v61 }
 0x3d9   : > { %v798_v63 = vpop.xlane.xlu0 %797 }
 0x3da   : > { %1672 = vpow2.f32 %v808_v62  ;;  %v804_v1 = vsub.f32 %v735_v45, %v798_v63  ;;  %v1081_v45 = vsel %vm841_vm3, %v1028_v44, 0 }
 0x3dc   : > { %v810_v2 = vmul.f32 1.442695, %v804_v1 }
 0x3dd   : > { %v801_v4 = vpop.xlane.xlu1 %800  ;;  %v520_v5 = vpop.permute.xlu0 %519 }
 0x3de   : > { %1674 = vpow2.f32 %v810_v2  ;;  %v805_v6 = vsub.f32 %v784_v50, %v801_v4  ;;  %v560_v7 = vadd.f32 %v559_v31, %v520_v5  ;;  %v1127_v50 = vsel %vm841_vm3, %v1029_v46, 0 }
 0x3e0   : > { %v812_v8 = vmul.f32 1.442695, %v805_v6  ;;  %583 = vrot.lane.b32.xlu0 %v560_v7, %s1909_s14  ;;  %v589_v9 = vpack.c.bf16 %v560_v7, %v560_v7 }
 0x3e2   : > { %1676 = vpow2.f32 %v812_v8  ;;  %v843_v10 = vsel %vm841_vm3, %v589_v9, 0 }
 0x3e3   : > { %1527 = vmatpush3.bf16.msra.mxu0 %v843_v10 }
 0x3e4   : > { %v1673_v11 = vpop.eup %1672  ;;  %586 = vrot.lane.b32.xlu0 %v560_v7, %s1906_s22  ;;  %1538 = vmatprep.subr.bf16.mxu0 %v1904_v0 }
 0x3e5   : > { %v817_v12 = vsel %vm596_vm2, %v1673_v11, 0.0 }
 0x3e6   : > { %818 = vadd.xlane.f32.xlu1 %v817_v12 }
 0x3e8   : > { %v1675_v13 = vpop.eup %1674 }
 0x3e9   : > { %v820_v14 = vsel %vm596_vm2, %v1675_v13, 0.0 }
 0x3ea   : > { %821 = vadd.xlane.f32.xlu1 %v820_v14 }
 0x3ec   : > { %v1677_v15 = vpop.eup %1676 }
 0x3ed   : > { %v823_v16 = vsel %vm596_vm2, %v1677_v15, 0.0 }
 0x3ee   : > { %824 = vadd.xlane.f32.xlu1 %v823_v16 }
 0x3ff   : > { %580 = vrot.lane.b32.xlu1 %v560_v7, %s1907_s24 }
 0x406   : > { %v816_v17 = vpop.xlane.xlu1 %815 }
 0x407   : > { %1678 = vrcp.f32 %v816_v17 }
 0x411   : > { %v1679_v18 = vpop.eup %1678 }
 0x412   : > { %v830_v19 = vmul.f32 %v1679_v18, %v1671_v58  ;;  %v1173_v58 = vsel %vm841_vm3, %v1030_v53, 0 }
 0x414   : > { %v834_v20 = vpack.c.bf16 %v830_v19, %v830_v19 }
 0x416   : > { %1529 = vmatmul.mubr.msk.bf16.vlgmr.msra.gmra.mrb[12].mxu0 %vm596_vm2, %v834_v20 }
 0x417   : > { %1540 = vmatprep.mubr.msk.bf16.mxu0 %vm1905_vm0, %v1904_v0 }
 0x452   : > { %v584_v21 = vpop.permute.xlu0 %583 }
 0x453   : > { %v591_v22 = vpack.c.bf16 %v584_v21, %v584_v21 }
 0x455   : > { %v935_v23 = vsel %vm841_vm3, %v591_v22, 0 }
 0x456   : > { %1539 = vmatpush3.bf16.msra.mxu0 %v935_v23  ;;  %v587_v28 = vpop.permute.xlu0 %586 }
 0x457   : > { %1550 = vmatprep.subr.bf16.mxu0 %v1904_v0  ;;  %v592_v33 = vpack.c.bf16 %v587_v28, %v587_v28 }
 0x459   : > { %v981_v41 = vsel %vm841_vm3, %v592_v33, 0 }
 0x473   : > { %v819_v24 = vpop.xlane.xlu1 %818 }
 0x474   : > { %1680 = vrcp.f32 %v819_v24 }
 0x477   : > { %v822_v25 = vpop.xlane.xlu1 %821 }
 0x478   : > { %1682 = vrcp.f32 %v822_v25 }
 0x47b   : > { %v825_v26 = vpop.xlane.xlu1 %824 }
 0x47c   : > { %1684 = vrcp.f32 %v825_v26  ;;  %v1451_v26 = vld [vmem:[#allocation7] ss:$0 sm:$0xff] }
 0x47e   : > { %v1681_v27 = vpop.eup %1680 }
 0x47f   : > { %v581_v29 = vpop.permute.xlu1 %580  ;;  %v831_v30 = vmul.f32 %v1681_v27, %v1673_v11 }
 0x480   : > { %v590_v31 = vpack.c.bf16 %v581_v29, %v581_v29 }
 0x481   : > { %v835_v37 = vpack.c.bf16 %v831_v30, %v831_v30 }
 0x482   : > { %v1683_v32 = vpop.eup %1682  ;;  %v889_v34 = vsel %vm841_vm3, %v590_v31, 0 }
 0x483   : > { %v832_v36 = vmul.f32 %v1683_v32, %v1675_v13  ;;  %1533 = vmatpush3.bf16.msra.mxu1 %v889_v34 }
 0x484   : > { %1544 = vmatprep.subr.bf16.mxu1 %v1904_v0 }
 0x485   : > { %v836_v38 = vpack.c.bf16 %v832_v36, %v832_v36 }
 0x486   : > { %v1685_v40 = vpop.eup %1684  ;;  %1535 = vmatmul.mubr.msk.bf16.vlgmr.msra.gmra.mrb[12].mxu1 %vm596_vm2, %v835_v37 }
 0x487   : > { %1541 = vmatmul.mubr.msk.bf16.vlgmr.msra.gmra.mrb[16].mxu0 %vm596_vm2, %v836_v38  ;;  %1545 = vmatpush3.bf16.msra.mxu1 %v981_v41  ;;  %v833_v42 = vmul.f32 %v1685_v40, %v1677_v15 }
 0x488   : > { %1546 = vmatprep.mubr.msk.bf16.mxu1 %vm1905_vm0, %v1904_v0  ;;  %1551 = vmatpush3.bf16.msra.mxu0 %v1035_v39 }
 0x489   : > { %1552 = vmatprep.mubr.msk.bf16.mxu0 %vm1905_vm0, %v1904_v0  ;;  %1556 = vmatprep.subr.bf16.mxu1 %v1904_v0  ;;  %v837_v43 = vpack.c.bf16 %v833_v42, %v833_v42 }
 0x48a   : > { %1562 = vmatprep.subr.bf16.mxu0 %v1904_v0 }
 0x48e   : > { %1547 = vmatmul.mubr.msk.bf16.vlgmr.msra.gmra.mrb[16].mxu1 %vm596_vm2, %v837_v43  ;;  %v1452_v43 = vld [vmem:[#allocation9] ss:$0 sm:$0xff] }
 0x48f   : > { %1558 = vmatprep.mubr.msk.bf16.mxu1 %vm1905_vm0, %v1904_v0  ;;  %1557 = vmatpush3.bf16.msra.mxu1 %v1081_v45  ;;  %v1453_v45 = vld [vmem:[#allocation10] ss:$0 sm:$0xff] }
 0x490   : > { %1568 = vmatprep.subr.bf16.mxu1 %v1904_v0 }
 0x4e9   : > { %v879_v47 = vpop.f32.mrb[12].mxu0 }
 0x4ea   : > { %v1023_v48 = vpack.c.bf16 %v879_v47, %v879_v47  ;;  %v1530_v49 = vpop.f32.mrb[13].mxu0 }
 0x4eb   : > { %v882_v51 = vpop.f32.mrb[14].mxu0 }
 0x4ec   : > { %v1531_v52 = vpop.f32.mrb[15].mxu0  ;;  %1553 = vmatmul.mubr.msk.bf16.vlgmr.msra.gmra.mrb[20].mxu0 %vm596_vm2, %v1023_v48 }
 0x4ed   : > { %1563 = vmatpush3.bf16.msra.mxu0 %v1127_v50  ;;  %1564 = vmatprep.mubr.msk.bf16.mxu0 %vm1905_vm0, %v1904_v0 }
 0x559   : > { %v925_v54 = vpop.f32.mrb[12].mxu1 }
 0x55a   : > { %v1024_v55 = vpack.c.bf16 %v925_v54, %v925_v54  ;;  %v1536_v56 = vpop.f32.mrb[13].mxu1  ;;  %v971_v57 = vpop.f32.mrb[16].mxu0 }
 0x55b   : > { %v1025_v59 = vpack.c.bf16 %v971_v57, %v971_v57  ;;  %v928_v60 = vpop.f32.mrb[14].mxu1  ;;  %v1542_v61 = vpop.f32.mrb[17].mxu0 }
 0x55c   : > { %v1537_v62 = vpop.f32.mrb[15].mxu1  ;;  %v974_v63 = vpop.f32.mrb[18].mxu0  ;;  %1559 = vmatmul.mubr.msk.bf16.vlgmr.msra.gmra.mrb[20].mxu1 %vm596_vm2, %v1024_v55 }
 0x55d   : > { %v1543_v1 = vpop.f32.mrb[19].mxu0  ;;  %1565 = vmatmul.mubr.msk.bf16.vlgmr.msra.gmra.mrb[24].mxu0 %vm596_vm2, %v1025_v59  ;;  %1569 = vmatpush3.bf16.msra.mxu1 %v1173_v58 }
 0x55e   : > { %1570 = vmatprep.mubr.msk.bf16.mxu1 %vm1905_vm0, %v1904_v0 }
 0x561   : > { %v1017_v2 = vpop.f32.mrb[16].mxu1 }
 0x562   : > { %v1026_v4 = vpack.c.bf16 %v1017_v2, %v1017_v2  ;;  %v1548_v5 = vpop.f32.mrb[17].mxu1 }
 0x563   : > { %v1020_v6 = vpop.f32.mrb[18].mxu1 }
 0x564   : > { %v1549_v7 = vpop.f32.mrb[19].mxu1  ;;  %1571 = vmatmul.mubr.msk.bf16.vlgmr.msra.gmra.mrb[24].mxu1 %vm596_vm2, %v1026_v4 }
 0x5bf   : > { %v1071_v8 = vpop.f32.mrb[20].mxu0 }
 0x5c0   : > { %v1554_v9 = vpop.f32.mrb[21].mxu0  ;;  %v1215_v13 = vsel %vm468_vm1, %v1071_v8, 0.0 }
 0x5c1   : > { %v1074_v10 = vpop.f32.mrb[22].mxu0 }
 0x5c2   : > { %v1555_v11 = vpop.f32.mrb[23].mxu0 }
 0x62f   : > { %v1117_v12 = vpop.f32.mrb[20].mxu1 }
 0x630   : > { %v1216_v14 = vsel %vm468_vm1, %v1117_v12, 0.0  ;;  %v1560_v15 = vpop.f32.mrb[21].mxu1  ;;  %v1163_v16 = vpop.f32.mrb[24].mxu0 }
 0x631   : > { %v1217_v17 = vadd.f32 %v1216_v14, %v1215_v13  ;;  %v1218_v0 = vsel %vm468_vm1, %v1163_v16, 0.0  ;;  %v1120_v18 = vpop.f32.mrb[22].mxu1  ;;  %v1566_v19 = vpop.f32.mrb[25].mxu0 }
 0x632   : > { %v1561_v20 = vpop.f32.mrb[23].mxu1  ;;  %v1166_v21 = vpop.f32.mrb[26].mxu0 }
 0x633   : > { %v1219_v22 = vadd.f32 %v1218_v0, %v1217_v17  ;;  %v1567_v23 = vpop.f32.mrb[27].mxu0 }
 0x637   : > { %v1209_v24 = vpop.f32.mrb[24].mxu1 }
 0x638   : > { %v1220_v25 = vsel %vm468_vm1, %v1209_v24, 0.0  ;;  %v1572_v27 = vpop.f32.mrb[25].mxu1 }
 0x639   : > { %v1221_v28 = vadd.f32 %v1220_v25, %v1219_v22  ;;  %v1212_v29 = vpop.f32.mrb[26].mxu1 }
 0x63a   : > { %v1573_v30 = vpop.f32.mrb[27].mxu1 }
 0x63b   : > { %v1229_v31 = vadd.f32 %v1451_v26, %v1221_v28 }
 0x63d   : > { %v1230_v32 = vadd.f32 %v1229_v31, %v2168_v3 }
 0x63f   : > { %v1233_v33 = vsel %vm468_vm1, %v1230_v32, 0.0 }
 0x640   : > { %1234 = vadd.xlane.f32.xlu0 %v1233_v33 }
 0x6cd   : > { %v1235_v34 = vpop.xlane.xlu0 %1234 }
 0x6ce   : > { %v1237_v35 = vmul.f32 0.03125, %v1235_v34 }
 0x6d0   : > { %v1238_v36 = vsub.f32 %v1230_v32, %v1237_v35 }
 0x6d2   : > { %v1239_v37 = vmul.f32 %v1238_v36, %v1238_v36 }
 0x6d4   : > { %v1240_v38 = vsel %vm468_vm1, %v1239_v37, 0.0 }
 0x6d5   : > { %1241 = vadd.xlane.f32.xlu1 %v1240_v38 }
 0x762   : > { %v1242_v39 = vpop.xlane.xlu1 %1241 }
 0x763   : > { %v1243_v40 = vmul.f32 0.03125, %v1242_v39 }
 0x765   : > { %v1244_v41 = vadd.f32 1e-05, %v1243_v40 }
 0x767   : > { %1686 = vrsqrt.f32 %v1244_v41 }
 0x771   : > { %v1687_v42 = vpop.eup %1686 }
 0x772   : > { %v1246_v44 = vmul.f32 %v1687_v42, %v1238_v36 }
 0x774   : > { %v1253_v3 = vmul.f32 %v1452_v43, %v1246_v44 }
 0x776   : > { %v1260_v46 = vadd.f32 %v1453_v45, %v1253_v3 }
 0x778   : > { %v1261_v47 = vpack.c.bf16 %v1260_v46, %v1260_v46 }
 0x77a   : > { %1263 = vst.msk [vmem:[%s439_s9] sm:$0xf] %vm1262_vm4, %v1261_v47 }
 0x77b PF: > { %s22_s29 = sadd.s32 1, %s1894_s29   ;;  %s2298_s27 = smov %s1890_s28 }
 0x77c   : > { %p19_p8 = scmp.ge.s32.totalorder %s22_s29, 4   ;;  %s2299_s28 = smov %s2301_s16 }
 0x77e   :  { %21 = sbr.rel (!%p19_p8) target bundleno = 5 (0x5), region = 110 }
 0x785   :  { %1289 = vsyncpa [#allocation3], 1 }
 0x786   :  { %1291 = vsyncpa [#allocation3 + $0x1], 1 }
 0x787   :  { %1292 = vsyncpa [#allocation5], 1 }
 0x788   :  { %1293 = vsyncpa [#allocation8], 1 }
 0x789   :  { %1294 = vsyncpa [#allocation11], 1 }

// kernel: base_transformer_layer_forward.4
= control target key start
LH: loop header
LB: loop body
LE: loop exit
PB: predicated region body
PF: predicated region fallthrough
CT: control target
= control target key end

     0   :  { %s2560_s0 = inlined_call_operand.vmem [shape: bf16[2,8,32], index: 0, kind: input, shape index: {}]   ;;  %s2561_s1 = inlined_call_operand.vmem [shape: f32[2,16,32], index: 1, kind: input, shape index: {}]   ;;  %s2562_s2 = inlined_call_operand.vmem [shape: f32[2,16,32], index: 2, kind: input, shape index: {}]   ;;  %s2563_s3 = inlined_call_operand.vmem [shape: f32[2,8,32], index: 3, kind: input, shape index: {}]   ;;  %s2564_s4 = inlined_call_operand.vmem [shape: f32[2,16,32], index: 4, kind: input, shape index: {}]   ;;  %s2565_s5 = inlined_call_operand.hbm [shape: bf16[32,96], index: 5, kind: input, shape index: {}]   ;;  %s2566_s6 = inlined_call_operand.vmem [shape: f32[1,96], index: 6, kind: input, shape index: {}]   ;;  %s2567_s7 = inlined_call_operand.hbm [shape: bf16[4,8,32], index: 7, kind: input, shape index: {}]   ;;  %s2568_s8 = inlined_call_operand.vmem [shape: f32[1,32], index: 8, kind: input, shape index: {}]   ;;  %s2569_s9 = inlined_call_operand.vmem [shape: f32[1,32], index: 9, kind: input, shape index: {}]   ;;  %s2570_s10 = inlined_call_operand.vmem [shape: f32[1,32], index: 10, kind: input, shape index: {}]   ;;  %s2571_s11 = inlined_call_operand.vmem [shape: bf16[2,8,32], index: 11, kind: output, shape index: {0}]   ;;  %s2572_s12 = inlined_call_operand.hbm [shape: bf16[2,8,16], index: 12, kind: output, shape index: {1}]  }
   0x1   :  { %2584 = sst [smem:[#allocation18_spill]] %s2571_s11 }
   0x2   :  { %18 = vsyncpa [#allocation3], 0 }
   0x3   :  { %19 = vsyncpa [#allocation6], 0 }
   0x4   :  { %20 = vsyncpa [#allocation4], 0 }
   0x5   :  { %22 = vsyncpa [#allocation4 + $0x1], 0  ;;  %s2214_s21 = smov 0   ;;  %s2216_s22 = smov 0  }
   0x6   :  { %s2218_s23 = smov 0   ;;  %s2220_s24 = smov 0  }
   0x7   :  { %s2222_s25 = smov 0   ;;  %s2224_s26 = smov 0  }
   0x8 LB: > { %2585 = sst [smem:[#allocation11_spill]] %s2115_s21  ;;  %s1682_s27 = sadd.s32 4294967295, %s2135_s26   ;;  %s2135_s26 = sphi %s2224_s26, %s28_s26   ;;  %s2131_s25 = sphi %s2222_s25, %s2608_s25   ;;  %s2127_s24 = sphi %s2220_s24, %s2607_s24   ;;  %s2123_s23 = sphi %s2218_s23, %s2606_s23   ;;  %s2119_s22 = sphi %s2216_s22, %s2610_s22   ;;  %s2115_s21 = sphi %s2214_s21, %s2609_s21  }
   0x9   : > { %2586 = sst [smem:[#allocation12_spill]] %s2123_s23  ;;  %s1683_s28 = sadd.s32 4294967294, %s2135_s26  }
   0xa   : > { %2587 = sst [smem:[#allocation13_spill]] %s2131_s25  ;;  %s40_s29 = sadd.s32 1, %s2131_s25 }
   0xb   : > { %2588 = sst [smem:[#allocation14_spill]] %s2135_s26  ;;  %s337_s30 = sadd.s32 1, %s2123_s23 }
   0xc   : > { %p42_p0 = scmp.ge.s32.totalorder %s40_s29, 2  ;;  %p347_p1 = scmp.ne.s32.totalorder %s2123_s23, %s2119_s22 }
   0xd   : > { %p348_p2 = scmp.eq.s32.totalorder %s1682_s27, 1  ;;  %p353_p3 = scmp.ne.s32.totalorder %s2119_s22, %s2115_s21 }
   0xe   : > { %s2612_s29 = smov (%p42_p0, %s40_s29), 0  ;;  %p354_p5 = scmp.eq.s32.totalorder %s1683_s28, 1 }
   0xf   : > { %2589 = sst [smem:[#allocation15_spill]] %s2612_s29  ;;  %p2254_p4 = por %p348_p2, %p347_p1 }
  0x10   : > { %s332_s14 = ssub.s32 %s2131_s25, %s2612_s29  ;;  %p1684_p6 = scmp.ge.s32.totalorder %s2135_s26, 1 }
  0x11   : > { %s2590_s13 = scalar_select %p2254_p4, 1, 0 }
  0x12   : > { %p335_p7 = scmp.eq.s32.totalorder %s332_s14, 0  ;;  %p2261_p8 = por %p354_p5, %p353_p3 }
  0x13   : > { %p361_p9 = scmp.lt.s32.totalorder %s2135_s26, 3  ;;  %p2273_p11 = scmp.eq.s32.totalorder %s1682_s27, 0 }
  0x14   : > { %s2591_s15 = scalar_select %p2261_p8, 1, 0 }
  0x15   : > { %s2267_s16 = scalar_select %p335_p7, %s2123_s23, %s337_s30  }
  0x16   : > { %2592 = sst [smem:[#allocation16_spill]] %s2591_s15  ;;  %p2269_p10 = pnand %p1684_p6, %p361_p9 }
  0x17   : > { %2593 = sst [smem:[#allocation17_spill]] %s2267_s16  ;;  %s2137_s19 = smov [#allocation2]  }
  0x18   : > { %s2594_s17 = scalar_select %p2269_p10, 1, 0 }
  0x19   : > { %s2595_s18 = scalar_select %p2273_p11, 1, 0 }
  0x1a   : > { %p1868_p12 = pneg %p2269_p10  ;;  %s373_s20 = sshll.u32 %s2137_s19, 4  ;;  %s374_s20 = int_to_ptr.vmem [resolvable:$true] %s373_s20 }
  0x1b   : > { %s2138_s30 = smov [#allocation5]   ;;  %s1993_s25 = scalar_lea.hbm %s2565_s5, 256 }
  0x1c   : > { %p2281_p13 = pnand %p2273_p11, %p1868_p12  ;;  %s389_s14 = sshll.u32 %s2138_s30, 4  ;;  %s2285_s14 = int_to_ptr.vmem [resolvable:$true] %s389_s14 }
  0x1d   : > { %p1994_p0 = scmp.ne.s32.totalorder %s2565_s5, %s1993_s25  ;;  %p2000_p5 = scmp.lt.u32.totalorder %s1993_s25, %s2565_s5 }
  0x1e   : > { %p1995_p1 = pneg %p2281_p13 }
  0x20   : > { %p1996_p2 = pnand %p1995_p1, %p1994_p0 }
  0x22   : > { %p1997_p3 = pneg %p1996_p2 }
  0x24   : > { %p2002_p6 = pnand %p2000_p5, %p1997_p3 }
  0x26   : > { %2005 = shalt.err (!%p2002_p6)
}
  0x27   : > { %s2006_s30 = scalar_lea.vmem %s374_s20, 256  ;;  %p2014_p8 = scmp.lt.s32.totalorder %s374_s20, %s374_s20 }
  0x28   : > { %p2007_p7 = scmp.ne.s32.totalorder %s374_s20, %s2006_s30  ;;  %p2015_p4 = scmp.lt.s32.totalorder %s2006_s30, %s2006_s30 }
  0x2a   : > { %p2009_p9 = pnand %p2007_p7, %p1995_p1  ;;  %p2016_p11 = por %p2015_p4, %p2014_p8 }
  0x2c   : > { %p2010_p12 = pneg %p2009_p9 }
  0x2e   : > { %p2017_p10 = pnand %p2016_p11, %p2010_p12 }
  0x30   : > { %2020 = shalt.err (!%p2017_p10)
}
  0x31   : > { %s2139_s23 = smov 64   ;;  %s2140_s29 = smov 4  }
  0x32   : > { %1871 = dma.hbm_to_vmem [thread:$0]  (!%p2281_p13), %s2565_s5, 256, %s374_s20, [#allocation3], %s2139_s23, %s2139_s23, %s2140_s29  }
  0x33   : > { %s2021_s19 = scalar_lea.hbm %s2567_s7, 256 }
  0x34   : > { %p2022_p0 = scmp.ne.s32.totalorder %s2567_s7, %s2021_s19  ;;  %p2028_p10 = scmp.lt.u32.totalorder %s2021_s19, %s2567_s7 }
  0x36   : > { %p2024_p4 = pnand %p2022_p0, %p1995_p1 }
  0x38   : > { %p2025_p8 = pneg %p2024_p4 }
  0x3a   : > { %p2030_p11 = pnand %p2028_p10, %p2025_p8 }
  0x3c   : > { %2033 = shalt.err (!%p2030_p11)
}
  0x3d   : > { %s2034_s20 = scalar_lea.vmem %s2285_s14, 256  ;;  %p2042_p6 = scmp.lt.s32.totalorder %s2285_s14, %s2285_s14 }
  0x3e   : > { %p2035_p2 = scmp.ne.s32.totalorder %s2285_s14, %s2034_s20  ;;  %p2043_p7 = scmp.lt.s32.totalorder %s2034_s20, %s2034_s20 }
  0x40   : > { %p2037_p3 = pnand %p2035_p2, %p1995_p1  ;;  %p2044_p9 = por %p2043_p7, %p2042_p6 }
  0x42   : > { %p2038_p5 = pneg %p2037_p3 }
  0x44   : > { %p2045_p12 = pnand %p2044_p9, %p2038_p5 }
  0x46   : > { %2048 = shalt.err (!%p2045_p12)
}
  0x47   : > { %1874 = dma.hbm_to_vmem [thread:$0]  (!%p2281_p13), %s2567_s7, 256, %s2285_s14, [#allocation6], %s2139_s23, %s2139_s23, %s2140_s29  }
  0x48   : > { %p2597_p0 = scmp.ne.s32.totalorder %s2594_s17, 0 }
  0x49   : > { %p2598_p4 = scmp.ne.s32.totalorder (!%p2597_p0), %s2595_s18, 0 }
  0x4a   : > { %458 = sbr.rel (%p2597_p0) target bundleno = 1843 (0x733), region = 64 }
  0x51   : > { %2102 = dma.done.wait (%p2598_p4), [#allocation3], 256  }
  0x52   : > { %2104 = vsyncadd (%p2598_p4), [#allocation3], 4294967040 }
  0x53   : > { %2106 = dma.done.wait (%p2598_p4), [#allocation6], 256  }
  0x54   : > { %2108 = vsyncadd (%p2598_p4), [#allocation6], 4294967040  ;;  %p535_p1 = scmp.lt.s32.totalorder %s2127_s24, 1  ;;  %v2141_v0 = vmov 0.0   ;;  %vm2142_vm0 = vmmov 0   ;;  %v1973_v1 = vld [vmem:[#allocation2] sm:$0xff]  }
  0x55   : > { %1770 = vmatprep.subr.bf16.mxu1 %v2141_v0  ;;  %1774 = vmatprep.mubr.msk.bf16.mxu1 %vm2142_vm0, %v2141_v0  ;;  %s2143_s16 = smov 96   ;;  %v1974_v2 = vld [vmem:[#allocation2 + $0x8] sm:$0xff]   ;;  %v2371_v6 = vld [vmem:[%s2566_s6] ss:$0 sm:$0xff]  ;;  %vm608_vm1 = vcmask 261120   ;;  %s2144_s30 = smov 64  }
  0x56   : > { %s2349_s26 = scalar_select %p535_p1, %s2127_s24, 1  ;;  %1762 = vmatprep.subr.bf16.mxu0 %v2141_v0  ;;  %1766 = vmatprep.mubr.msk.bf16.mxu0 %vm2142_vm0, %v2141_v0  ;;  %vm822_vm2 = vcmask 64512   ;;  %vm1007_vm3 = vcmask 130048   ;;  %vm1239_vm4 = vcmask 1043456   ;;  %vm1480_vm5 = vcmask 125952  }
  0x57   : > { %653 = vrot.lane.b32.xlu0 %v1973_v1, %s2143_s16  ;;  %1763 = vmatpush3.bf16.msra.mxu0 %v1973_v1  ;;  %s2146_s27 = smov 120   ;;  %s2147_s19 = smov 104  }
  0x58   : > { %s1692_s17 = sshll.u32 %s2349_s26, 2  ;;  %s1697_s18 = sshll.u32 %s2349_s26, 3  ;;  %1764 = vmatprep.subr.bf16.mxu0 %v2141_v0  ;;  %659 = vrot.lane.b32.xlu1 %v2371_v6, %s2143_s16 }
  0x59   : > { %s541_s23 = scalar_lea.vmem %s2560_s0, %s1692_s17  ;;  %s558_s15 = scalar_lea.vmem %s2563_s3, %s1697_s18 }
  0x5a   : > { %v2365_v3 = vld [vmem:[%s541_s23] sm:$0xf]  ;;  %s2383_s20 = sshll.u32 %s2349_s26, 4  ;;  %s1723_s28 = sshll.u32 %s2127_s24, 6 }
  0x5b   : > { %v574_v4 = vld [vmem:[%s558_s15] sm:$0xff]  ;;  %v573_v5 = vunpack.c.l.bf16 %v2365_v3  ;;  %655 = vrot.lane.b32.xlu0 %v1974_v2, %s2143_s16  ;;  %1765 = vmatpush3.bf16.msra.mxu0 %v1974_v2  ;;  %s546_s18 = scalar_lea.vmem %s2561_s1, %s2383_s20  ;;  %s563_s23 = scalar_lea.vmem %s2564_s4, %s2383_s20 }
  0x5c   : > { %1778 = vmatprep.subr.bf16.mxu0 %v2141_v0  ;;  %707 = vrot.lane.b32.xlu1 %v1973_v1, %s2144_s30  ;;  %v581_v9 = vld [vmem:[%s546_s18] sm:$0xff]  ;;  %v582_v10 = vld [vmem:[%s546_s18 + $0x8] sm:$0xff]  ;;  %s551_s15 = scalar_lea.vmem %s2562_s2, %s2383_s20  ;;  %s2145_s16 = smov 112  }
  0x5d   : > { %v575_v7 = vadd.f32 %v574_v4, %v573_v5  ;;  %v585_v11 = vld [vmem:[%s563_s23] sm:$0xff]  ;;  %v586_v12 = vld [vmem:[%s563_s23 + $0x8] sm:$0xff]  ;;  %s2506_s25 = scalar_lea.hbm %s2572_s12, %s1723_s28  ;;  %p2599_p8 = scmp.ne.s32.totalorder %s2590_s13, 0 }
  0x5e   : > { %v587_v14 = vadd.f32 %v585_v11, %v581_v9  ;;  %v588_v15 = vadd.f32 %v586_v12, %v582_v10  ;;  %v583_v25 = vld [vmem:[%s551_s15] sm:$0xff]  ;;  %v584_v26 = vld [vmem:[%s551_s15 + $0x8] sm:$0xff] }
  0x5f   : > { %v589_v8 = vpack.c.bf16 %v575_v7, %v575_v7  ;;  %709 = vrot.lane.b32.xlu0 %v1974_v2, %s2144_s30  ;;  %v706_v27 = vpack.c.bf16 %v584_v26, %v583_v25 }
  0x60   : > { %v652_v17 = vpack.c.bf16 %v588_v15, %v587_v14 }
  0x61   : > { %1767 = vmatmul.mubr.msk.bf16.vlgmr.msra.gmra.mrb[0].mxu0 %vm608_vm1, %v589_v8 }
  0x62   : > { %1782 = vmatprep.mubr.msk.bf16.mxu0 %vm2142_vm0, %v2141_v0 }
  0xc9   : > { %v654_v13 = vpop.permute.xlu0 %653 }
  0xca   : > { %1771 = vmatpush3.bf16.msra.mxu1 %v654_v13  ;;  %v660_v18 = vpop.permute.xlu1 %659 }
  0xcb   : > { %1772 = vmatprep.subr.bf16.mxu1 %v2141_v0 }
  0xcd   : > { %v656_v16 = vpop.permute.xlu0 %655 }
  0xce   : > { %1773 = vmatpush3.bf16.msra.mxu1 %v656_v16  ;;  %v708_v22 = vpop.permute.xlu1 %707 }
  0xcf   : > { %1786 = vmatprep.subr.bf16.mxu1 %v2141_v0  ;;  %1779 = vmatpush3.bf16.msra.mxu0 %v708_v22 }
  0xd0   : > { %1780 = vmatprep.subr.bf16.mxu0 %v2141_v0 }
  0xd1   : > { %1775 = vmatmul.mubr.msk.bf16.vlgmr.msra.gmra.mrb[0].mxu1 %vm608_vm1, %v652_v17  ;;  %v710_v24 = vpop.permute.xlu0 %709 }
  0xd2   : > { %1788 = vmatprep.mubr.msk.bf16.mxu1 %vm2142_vm0, %v2141_v0 }
  0xd3   : > { %1781 = vmatpush3.bf16.msra.mxu0 %v710_v24 }
  0xd4   : > { %1792 = vmatprep.subr.bf16.mxu0 %v2141_v0 }
  0xd6   : > { %1783 = vmatmul.mubr.msk.bf16.vlgmr.msra.gmra.mrb[4].mxu0 %vm608_vm1, %v706_v27 }
  0xd7   : > { %1794 = vmatprep.mubr.msk.bf16.mxu0 %vm2142_vm0, %v2141_v0 }
 0x134   : > { %v646_v19 = vpop.f32.mrb[0].mxu0 }
 0x135   : > { %v1768_v20 = vpop.f32.mrb[1].mxu0  ;;  %v647_v37 = vadd.f32 %v2371_v6, %v646_v19 }
 0x136   : > { %v649_v21 = vpop.f32.mrb[2].mxu0 }
 0x137   : > { %v1769_v23 = vpop.f32.mrb[3].mxu0  ;;  %v770_v38 = vpack.c.bf16 %v647_v37, %v647_v37 }
 0x1a4   : > { %v699_v28 = vpop.f32.mrb[0].mxu1 }
 0x1a5   : > { %v1776_v29 = vpop.f32.mrb[1].mxu1  ;;  %v700_v31 = vadd.f32 %v699_v28, %v660_v18 }
 0x1a6   : > { %v702_v30 = vpop.f32.mrb[2].mxu1 }
 0x1a7   : > { %v703_v32 = vadd.f32 %v702_v30, %v660_v18  ;;  %v1777_v33 = vpop.f32.mrb[3].mxu1 }
 0x1a9   : > { %v1948_v34 = vpack.i.bf16 %v703_v32, %v700_v31  ;;  %v794_v35 = vpack.c.bf16 %v703_v32, %v700_v31  ;;  %v753_v60 = vpop.f32.mrb[4].mxu0 }
 0x1aa   : > { %v1784_v61 = vpop.f32.mrb[5].mxu0 }
 0x1ab   : > { %1949 = vrot.lane.b32.xlu0 %v1948_v34, %s2145_s16  ;;  %1944 = vrot.lane.b32.xlu1 %v1948_v34, %s2146_s27  ;;  %v827_v36 = vsel %vm822_vm2, %v794_v35, 0  ;;  %v756_v62 = vpop.f32.mrb[6].mxu0 }
 0x1ac   : > { %1787 = vmatpush3.bf16.xpose.msra.mxu1 %v827_v36  ;;  %v1785_v63 = vpop.f32.mrb[7].mxu0 }
 0x1ad   : > { %1798 = vmatprep.subr.bf16.mxu1 %v2141_v0 }
 0x1af   : > { %1954 = vrot.lane.b32.xlu0 %v1948_v34, %s2147_s19  ;;  %761 = vrot.lane.b32.xlu1 %v647_v37, %s2146_s27 }
 0x1b3   : > { %1789 = vmatmul.mubr.msk.bf16.vlgmr.msra.gmra.mrb[4].mxu1 %vm822_vm2, %v770_v38  ;;  %767 = vrot.lane.b32.xlu0 %v647_v37, %s2147_s19 }
 0x1b4   : > { %764 = vrot.lane.b32.xlu1 %v647_v37, %s2145_s16  ;;  %1800 = vmatprep.mubr.msk.bf16.mxu1 %vm2142_vm0, %v2141_v0 }
 0x21d   : > { %v1945_v39 = vpop.permute.xlu1 %1944  ;;  %v1950_v40 = vpop.permute.xlu0 %1949 }
 0x21e   : > { %v1947_v41 = vunpack.i.h.bf16 %v1945_v39  ;;  %v1946_v42 = vunpack.i.l.bf16 %v1945_v39  ;;  %v1952_v43 = vunpack.i.h.bf16 %v1950_v40  ;;  %v1951_v44 = vunpack.i.l.bf16 %v1950_v40 }
 0x220   : > { %v795_v45 = vpack.c.bf16 %v1947_v41, %v1946_v42  ;;  %v796_v46 = vpack.c.bf16 %v1952_v43, %v1951_v44 }
 0x221   : > { %v1955_v47 = vpop.permute.xlu0 %1954  ;;  %v762_v48 = vpop.permute.xlu1 %761 }
 0x222   : > { %v1957_v49 = vunpack.i.h.bf16 %v1955_v47  ;;  %v1956_v50 = vunpack.i.l.bf16 %v1955_v47  ;;  %v873_v51 = vsel %vm822_vm2, %v795_v45, 0  ;;  %v919_v52 = vsel %vm822_vm2, %v796_v46, 0 }
 0x223   : > { %1793 = vmatpush3.bf16.xpose.msra.mxu0 %v873_v51  ;;  %1799 = vmatpush3.bf16.xpose.msra.mxu1 %v919_v52  ;;  %v771_v54 = vpack.c.bf16 %v762_v48, %v762_v48 }
 0x224   : > { %1804 = vmatprep.subr.bf16.mxu0 %v2141_v0  ;;  %1810 = vmatprep.subr.bf16.mxu1 %v2141_v0  ;;  %v797_v53 = vpack.c.bf16 %v1957_v49, %v1956_v50 }
 0x225   : > { %v768_v58 = vpop.permute.xlu0 %767 }
 0x226   : > { %v765_v55 = vpop.permute.xlu1 %764  ;;  %v965_v57 = vsel %vm822_vm2, %v797_v53, 0  ;;  %v773_v59 = vpack.c.bf16 %v768_v58, %v768_v58 }
 0x227   : > { %v772_v56 = vpack.c.bf16 %v765_v55, %v765_v55 }
 0x22a   : > { %1795 = vmatmul.mubr.msk.bf16.vlgmr.msra.gmra.mrb[8].mxu0 %vm822_vm2, %v771_v54  ;;  %1801 = vmatmul.mubr.msk.bf16.vlgmr.msra.gmra.mrb[8].mxu1 %vm822_vm2, %v772_v56 }
 0x22b   : > { %1805 = vmatpush3.bf16.xpose.msra.mxu0 %v965_v57  ;;  %1806 = vmatprep.mubr.msk.bf16.mxu0 %vm2142_vm0, %v2141_v0 }
 0x22c   : > { %1812 = vmatprep.mubr.msk.bf16.mxu1 %vm2142_vm0, %v2141_v0  ;;  %1816 = vmatprep.subr.bf16.mxu0 %v2141_v0 }
 0x232   : > { %1807 = vmatmul.mubr.msk.bf16.vlgmr.msra.gmra.mrb[12].mxu0 %vm822_vm2, %v773_v59 }
 0x233   : > { %1818 = vmatprep.mubr.msk.bf16.mxu0 %vm2142_vm0, %v2141_v0 }
 0x286   : > { %v863_v1 = vpop.f32.mrb[4].mxu1 }
 0x287   : > { %v1008_v2 = vsel %vm1007_vm3, %v863_v1, -inf  ;;  %v1790_v4 = vpop.f32.mrb[5].mxu1 }
 0x288   : > { %1009 = vmax.xlane.f32.xlu1 %v1008_v2  ;;  %v866_v7 = vpop.f32.mrb[6].mxu1 }
 0x289   : > { %v1791_v8 = vpop.f32.mrb[7].mxu1 }
 0x2fd   : > { %v909_v9 = vpop.f32.mrb[8].mxu0  ;;  %v955_v10 = vpop.f32.mrb[8].mxu1 }
 0x2fe   : > { %v1796_v11 = vpop.f32.mrb[9].mxu0  ;;  %v1011_v12 = vsel %vm1007_vm3, %v909_v9, -inf  ;;  %v1802_v13 = vpop.f32.mrb[9].mxu1  ;;  %v1014_v18 = vsel %vm1007_vm3, %v955_v10, -inf }
 0x2ff   : > { %1012 = vmax.xlane.f32.xlu0 %v1011_v12  ;;  %v912_v14 = vpop.f32.mrb[10].mxu0  ;;  %v958_v15 = vpop.f32.mrb[10].mxu1  ;;  %v1232_v11 = vld [vmem:[#allocation5] sm:$0xf] }
 0x300   : > { %v1797_v16 = vpop.f32.mrb[11].mxu0  ;;  %v1803_v17 = vpop.f32.mrb[11].mxu1 }
 0x303   : > { %1015 = vmax.xlane.f32.xlu0 %v1014_v18 }
 0x305   : > { %v1001_v19 = vpop.f32.mrb[12].mxu0 }
 0x306   : > { %v1808_v20 = vpop.f32.mrb[13].mxu0  ;;  %v1017_v21 = vsel %vm1007_vm3, %v1001_v19, -inf }
 0x307   : > { %1018 = vmax.xlane.f32.xlu1 %v1017_v21  ;;  %v1004_v22 = vpop.f32.mrb[14].mxu0 }
 0x308   : > { %v1809_v23 = vpop.f32.mrb[15].mxu0 }
 0x315   : > { %v1010_v24 = vpop.xlane.xlu1 %1009 }
 0x316   : > { %v1020_v25 = vsub.f32 %v863_v1, %v1010_v24 }
 0x318   : > { %v1024_v26 = vmul.f32 1.442695, %v1020_v25 }
 0x319   : > { %713 = vrot.lane.b32.xlu0 %v2371_v6, %s2144_s30  ;;  %s532_s30 = sand.u32 1, %s2119_s22  }
 0x31a   : > { %1975 = vpow2.f32 %v1024_v26  ;;  %s2469_s20 = sshll.u32 %s532_s30, 2  ;;  %s1490_s15 = scalar_lea.sflag [#allocation4], %s532_s30 }
 0x31b   : > { %s534_s11 = scalar_lea.vmem [#allocation7], %s2469_s20 }
 0x31c   : > { %s1507_s14 = sshll.u32 %s534_s11, 4  ;;  %s1508_s14 = int_to_ptr.vmem [resolvable:$true] %s1507_s14 }
 0x324   : > { %v1976_v27 = vpop.eup %1975 }
 0x325   : > { %v1032_v28 = vsel %vm1007_vm3, %v1976_v27, 0.0 }
 0x326   : > { %1033 = vadd.xlane.f32.xlu1 %v1032_v28 }
 0x38c   : > { %v1013_v29 = vpop.xlane.xlu0 %1012 }
 0x38d   : > { %v1021_v30 = vsub.f32 %v909_v9, %v1013_v29  ;;  %v1234_v29 = vld [vmem:[#allocation5 + $0x8] sm:$0xf] }
 0x38f   : > { %v1026_v31 = vmul.f32 1.442695, %v1021_v30 }
 0x390   : > { %v1016_v32 = vpop.xlane.xlu0 %1015 }
 0x391   : > { %1977 = vpow2.f32 %v1026_v31  ;;  %v1022_v33 = vsub.f32 %v955_v10, %v1016_v32 }
 0x393   : > { %v1028_v34 = vmul.f32 1.442695, %v1022_v33  ;;  %v1333_v33 = vsel %vm1239_vm4, %v1234_v29, 0 }
 0x394   : > { %v714_v35 = vpop.permute.xlu0 %713  ;;  %v1019_v36 = vpop.xlane.xlu1 %1018 }
 0x395   : > { %1979 = vpow2.f32 %v1028_v34  ;;  %v754_v37 = vadd.f32 %v753_v60, %v714_v35  ;;  %v757_v38 = vadd.f32 %v756_v62, %v714_v35  ;;  %v1023_v39 = vsub.f32 %v1001_v19, %v1019_v36  ;;  %v1235_v36 = vld [vmem:[#allocation5 + $0xc] sm:$0xf] }
 0x396   : > { %v1241_v19 = vsel %vm1239_vm4, %v1232_v11, 0 }
 0x397   : > { %v1030_v40 = vmul.f32 1.442695, %v1023_v39  ;;  %v1963_v6 = vpack.i.bf16 %v757_v38, %v754_v37  ;;  %v818_v41 = vpack.c.bf16 %v757_v38, %v754_v37 }
 0x399   : > { %1981 = vpow2.f32 %v1030_v40  ;;  %1964 = vrot.lane.b32.xlu0 %v1963_v6, %s2145_s16  ;;  %1811 = vmatpush3.bf16.msra.mxu1 %v818_v41  ;;  %s2049_s16 = scalar_lea.vmem %s1508_s14, 64 }
 0x39a   : > { %1822 = vmatprep.subr.bf16.mxu1 %v2141_v0  ;;  %p2050_p13 = scmp.ne.s32.totalorder %s1508_s14, %s2049_s16 }
 0x39b   : > { %v1978_v42 = vpop.eup %1977 }
 0x39c   : > { %v1035_v43 = vsel %vm1007_vm3, %v1978_v42, 0.0  ;;  %p2051_p10 = pnand %p2050_p13, %p2599_p8 }
 0x39d   : > { %1969 = vrot.lane.b32.xlu0 %v1963_v6, %s2147_s19  ;;  %1036 = vadd.xlane.f32.xlu1 %v1035_v43 }
 0x39e   : > { %p2052_p11 = pneg %p2051_p10 }
 0x39f   : > { %v1980_v44 = vpop.eup %1979 }
 0x3a0   : > { %v1038_v45 = vsel %vm1007_vm3, %v1980_v44, 0.0 }
 0x3a1   : > { %1039 = vadd.xlane.f32.xlu1 %v1038_v45 }
 0x3a3   : > { %v1982_v46 = vpop.eup %1981 }
 0x3a4   : > { %v1041_v47 = vsel %vm1007_vm3, %v1982_v46, 0.0 }
 0x3a5   : > { %1042 = vadd.xlane.f32.xlu1 %v1041_v47 }
 0x3b3   : > { %v1034_v48 = vpop.xlane.xlu1 %1033 }
 0x3b4   : > { %1983 = vrcp.f32 %v1034_v48 }
 0x3b6   : > { %1959 = vrot.lane.b32.xlu1 %v1963_v6, %s2146_s27  ;;  %s2148_s27 = smov [#allocation7]  }
 0x3b7   : > { %s2053_s19 = sshll.u32 %s2148_s27, 4  ;;  %s2054_s19 = int_to_ptr.vmem [resolvable:$false] %s2053_s19 }
 0x3b8   : > { %s2055_s21 = scalar_lea.vmem %s2054_s19, 128  ;;  %p2056_p2 = scmp.lt.s32.totalorder %s1508_s14, %s2054_s19 }
 0x3b9   : > { %p2057_p3 = scmp.lt.s32.totalorder %s2055_s21, %s2049_s16 }
 0x3bb   : > { %p2058_p5 = por %p2057_p3, %p2056_p2 }
 0x3bd   : > { %p2059_p6 = pnand %p2058_p5, %p2052_p11 }
 0x3be   : > { %v1984_v49 = vpop.eup %1983 }
 0x3bf   : > { %v1048_v50 = vmul.f32 %v1984_v49, %v1976_v27  ;;  %v1233_v27 = vld [vmem:[#allocation5 + $0x4] sm:$0xf] }
 0x3c0   : > { %v1287_v28 = vsel %vm1239_vm4, %v1233_v27, 0 }
 0x3c1   : > { %v1052_v51 = vpack.c.bf16 %v1048_v50, %v1048_v50  ;;  %v1470_v12 = vsel %vm1007_vm3, %v1048_v50, 0.0 }
 0x3c3   : > { %1813 = vmatmul.mubr.msk.bf16.vlgmr.msra.gmra.mrb[12].mxu1 %vm1007_vm3, %v1052_v51 }
 0x3c4   : > { %1824 = vmatprep.mubr.msk.bf16.mxu1 %vm2142_vm0, %v2141_v0 }
 0x40b   : > { %v1965_v52 = vpop.permute.xlu0 %1964 }
 0x40c   : > { %v1967_v53 = vunpack.i.h.bf16 %v1965_v52  ;;  %v1966_v54 = vunpack.i.l.bf16 %v1965_v52 }
 0x40e   : > { %v820_v55 = vpack.c.bf16 %v1967_v53, %v1966_v54 }
 0x40f   : > { %v1970_v60 = vpop.permute.xlu0 %1969 }
 0x410   : > { %1823 = vmatpush3.bf16.msra.mxu1 %v820_v55  ;;  %v1972_v4 = vunpack.i.h.bf16 %v1970_v60  ;;  %v1971_v7 = vunpack.i.l.bf16 %v1970_v60 }
 0x411   : > { %1834 = vmatprep.subr.bf16.mxu1 %v2141_v0 }
 0x412   : > { %v821_v17 = vpack.c.bf16 %v1972_v4, %v1971_v7 }
 0x42a   : > { %v1037_v56 = vpop.xlane.xlu1 %1036 }
 0x42b   : > { %1985 = vrcp.f32 %v1037_v56 }
 0x42e   : > { %v1040_v57 = vpop.xlane.xlu1 %1039 }
 0x42f   : > { %1987 = vrcp.f32 %v1040_v57 }
 0x432   : > { %v1043_v58 = vpop.xlane.xlu1 %1042 }
 0x433   : > { %1989 = vrcp.f32 %v1043_v58 }
 0x435   : > { %v1986_v59 = vpop.eup %1985 }
 0x436   : > { %v1049_v61 = vmul.f32 %v1986_v59, %v1978_v42  ;;  %v1960_v62 = vpop.permute.xlu1 %1959  ;;  %v1379_v42 = vsel %vm1239_vm4, %v1235_v36, 0 }
 0x437   : > { %v1962_v63 = vunpack.i.h.bf16 %v1960_v62  ;;  %v1961_v1 = vunpack.i.l.bf16 %v1960_v62 }
 0x438   : > { %v1471_v9 = vsel %vm1007_vm3, %v1049_v61, 0.0  ;;  %v1053_v14 = vpack.c.bf16 %v1049_v61, %v1049_v61 }
 0x439   : > { %v1988_v2 = vpop.eup %1987  ;;  %v819_v8 = vpack.c.bf16 %v1962_v63, %v1961_v1  ;;  %v1472_v18 = vadd.f32 %v1471_v9, %v1470_v12 }
 0x43a   : > { %v1050_v10 = vmul.f32 %v1988_v2, %v1980_v44 }
 0x43b   : > { %1817 = vmatpush3.bf16.msra.mxu0 %v819_v8 }
 0x43c   : > { %v1473_v13 = vsel %vm1007_vm3, %v1050_v10, 0.0  ;;  %v1054_v15 = vpack.c.bf16 %v1050_v10, %v1050_v10  ;;  %1828 = vmatprep.subr.bf16.mxu0 %v2141_v0  ;;  %v1719_v10 = vld [vmem:[%s2568_s8] ss:$0 sm:$0xff] }
 0x43d   : > { %v1990_v16 = vpop.eup %1989  ;;  %v1474_v21 = vadd.f32 %v1473_v13, %v1472_v18 }
 0x43e   : > { %v1051_v20 = vmul.f32 %v1990_v16, %v1982_v46  ;;  %1819 = vmatmul.mubr.msk.bf16.vlgmr.msra.gmra.mrb[16].mxu0 %vm1007_vm3, %v1053_v14  ;;  %1825 = vmatmul.mubr.msk.bf16.vlgmr.msra.gmra.mrb[16].mxu1 %vm1007_vm3, %v1054_v15 }
 0x43f   : > { %1829 = vmatpush3.bf16.msra.mxu0 %v821_v17  ;;  %1830 = vmatprep.mubr.msk.bf16.mxu0 %vm2142_vm0, %v2141_v0 }
 0x440   : > { %v1475_v22 = vsel %vm1007_vm3, %v1051_v20, 0.0  ;;  %1835 = vmatpush3.bf16.msra.mxu1 %v1241_v19  ;;  %1836 = vmatprep.mubr.msk.bf16.mxu1 %vm2142_vm0, %v2141_v0  ;;  %v1055_v25 = vpack.c.bf16 %v1051_v20, %v1051_v20 }
 0x441   : > { %v1476_v23 = vadd.f32 %v1475_v22, %v1474_v21  ;;  %1840 = vmatprep.subr.bf16.mxu0 %v2141_v0  ;;  %1846 = vmatprep.subr.bf16.mxu1 %v2141_v0 }
 0x443   : > { %v1478_v24 = vmul.f32 0.25, %v1476_v23 }
 0x445   : > { %v1479_v26 = vpack.c.bf16 %v1478_v24, %v1478_v24 }
 0x446   : > { %1831 = vmatmul.mubr.msk.bf16.vlgmr.msra.gmra.mrb[20].mxu0 %vm1007_vm3, %v1055_v25 }
 0x447   : > { %1842 = vmatprep.mubr.msk.bf16.mxu0 %vm2142_vm0, %v2141_v0  ;;  %1481 = vst.msk [vmem:[%s534_s11] sm:$0xf] %vm1480_vm5, %v1479_v26  ;;  %1841 = vmatpush3.bf16.msra.mxu0 %v1287_v28 }
 0x448   : > { %1852 = vmatprep.subr.bf16.mxu0 %v2141_v0 }
 0x496   : > { %v1093_v30 = vpop.f32.mrb[12].mxu1 }
 0x497   : > { %v1228_v31 = vpack.c.bf16 %v1093_v30, %v1093_v30  ;;  %v1814_v32 = vpop.f32.mrb[13].mxu1 }
 0x498   : > { %v1096_v34 = vpop.f32.mrb[14].mxu1 }
 0x499   : > { %v1815_v35 = vpop.f32.mrb[15].mxu1  ;;  %1837 = vmatmul.mubr.msk.bf16.vlgmr.msra.gmra.mrb[20].mxu1 %vm822_vm2, %v1228_v31 }
 0x49a   : > { %1847 = vmatpush3.bf16.msra.mxu1 %v1333_v33  ;;  %1848 = vmatprep.mubr.msk.bf16.mxu1 %vm2142_vm0, %v2141_v0 }
 0x511   : > { %v1136_v37 = vpop.f32.mrb[16].mxu0  ;;  %v1179_v38 = vpop.f32.mrb[16].mxu1 }
 0x512   : > { %v1229_v39 = vpack.c.bf16 %v1136_v37, %v1136_v37  ;;  %v1230_v40 = vpack.c.bf16 %v1179_v38, %v1179_v38  ;;  %v1820_v6 = vpop.f32.mrb[17].mxu0  ;;  %v1826_v41 = vpop.f32.mrb[17].mxu1 }
 0x513   : > { %v1139_v43 = vpop.f32.mrb[18].mxu0  ;;  %v1182_v44 = vpop.f32.mrb[18].mxu1 }
 0x514   : > { %v1821_v45 = vpop.f32.mrb[19].mxu0  ;;  %v1827_v46 = vpop.f32.mrb[19].mxu1  ;;  %1843 = vmatmul.mubr.msk.bf16.vlgmr.msra.gmra.mrb[24].mxu0 %vm822_vm2, %v1229_v39  ;;  %1849 = vmatmul.mubr.msk.bf16.vlgmr.msra.gmra.mrb[24].mxu1 %vm822_vm2, %v1230_v40 }
 0x515   : > { %1853 = vmatpush3.bf16.msra.mxu0 %v1379_v42  ;;  %1854 = vmatprep.mubr.msk.bf16.mxu0 %vm2142_vm0, %v2141_v0 }
 0x519   : > { %v1222_v47 = vpop.f32.mrb[20].mxu0 }
 0x51a   : > { %v1231_v48 = vpack.c.bf16 %v1222_v47, %v1222_v47  ;;  %v1832_v49 = vpop.f32.mrb[21].mxu0 }
 0x51b   : > { %v1225_v50 = vpop.f32.mrb[22].mxu0 }
 0x51c   : > { %v1833_v51 = vpop.f32.mrb[23].mxu0  ;;  %1855 = vmatmul.mubr.msk.bf16.vlgmr.msra.gmra.mrb[28].mxu0 %vm822_vm2, %v1231_v48 }
 0x56c   : > { %v1277_v52 = vpop.f32.mrb[20].mxu1 }
 0x56d   : > { %v1838_v53 = vpop.f32.mrb[21].mxu1  ;;  %v1421_v58 = vsel %vm608_vm1, %v1277_v52, 0.0 }
 0x56e   : > { %v1280_v54 = vpop.f32.mrb[22].mxu1 }
 0x56f   : > { %v1839_v55 = vpop.f32.mrb[23].mxu1 }
 0x5e7   : > { %v1323_v56 = vpop.f32.mrb[24].mxu0  ;;  %v1369_v57 = vpop.f32.mrb[24].mxu1 }
 0x5e8   : > { %v1422_v59 = vsel %vm608_vm1, %v1323_v56, 0.0  ;;  %v1844_v60 = vpop.f32.mrb[25].mxu0  ;;  %v1850_v61 = vpop.f32.mrb[25].mxu1  ;;  %v1424_v1 = vsel %vm608_vm1, %v1369_v57, 0.0 }
 0x5e9   : > { %v1423_v0 = vadd.f32 %v1422_v59, %v1421_v58  ;;  %v1326_v62 = vpop.f32.mrb[26].mxu0  ;;  %v1372_v63 = vpop.f32.mrb[26].mxu1 }
 0x5ea   : > { %v1845_v2 = vpop.f32.mrb[27].mxu0  ;;  %v1851_v4 = vpop.f32.mrb[27].mxu1 }
 0x5eb   : > { %v1425_v7 = vadd.f32 %v1424_v1, %v1423_v0 }
 0x5ef   : > { %v1415_v8 = vpop.f32.mrb[28].mxu0 }
 0x5f0   : > { %v1426_v9 = vsel %vm608_vm1, %v1415_v8, 0.0  ;;  %v1856_v11 = vpop.f32.mrb[29].mxu0 }
 0x5f1   : > { %v1427_v12 = vadd.f32 %v1426_v9, %v1425_v7  ;;  %v1418_v13 = vpop.f32.mrb[30].mxu0 }
 0x5f2   : > { %v1857_v14 = vpop.f32.mrb[31].mxu0 }
 0x5f3   : > { %v1435_v15 = vadd.f32 %v1719_v10, %v1427_v12 }
 0x5f5   : > { %v1436_v16 = vadd.f32 %v1435_v15, %v573_v5 }
 0x5f7   : > { %v1439_v17 = vsel %vm608_vm1, %v1436_v16, 0.0 }
 0x5f8   : > { %1440 = vadd.xlane.f32.xlu0 %v1439_v17 }
 0x685   : > { %v1441_v18 = vpop.xlane.xlu0 %1440 }
 0x686   : > { %v1443_v19 = vmul.f32 0.03125, %v1441_v18 }
 0x688   : > { %v1444_v20 = vsub.f32 %v1436_v16, %v1443_v19 }
 0x68a   : > { %v1445_v21 = vmul.f32 %v1444_v20, %v1444_v20 }
 0x68c   : > { %v1446_v22 = vsel %vm608_vm1, %v1445_v21, 0.0 }
 0x68d   : > { %1447 = vadd.xlane.f32.xlu1 %v1446_v22 }
 0x68e   : > { %2062 = shalt.err (!%p2059_p6)
}
 0x68f   : > { %s2063_s24 = scalar_lea.hbm %s2506_s25, 64  ;;  %s2067_s11 = scalar_lea.hbm %s2572_s12, 128 }
 0x690   : > { %p2064_p7 = scmp.ne.s32.totalorder %s2506_s25, %s2063_s24  ;;  %p2068_p0 = scmp.lt.u32.totalorder %s2506_s25, %s2572_s12 }
 0x691   : > { %p2069_p4 = scmp.lt.u32.totalorder %s2067_s11, %s2063_s24  ;;  %p2071_p13 = scmp.lt.u32.totalorder %s2063_s24, %s2506_s25 }
 0x692   : > { %p2065_p9 = pnand %p2064_p7, %p2599_p8 }
 0x693   : > { %p2070_p1 = por %p2069_p4, %p2068_p0 }
 0x694   : > { %p2066_p12 = pneg %p2065_p9 }
 0x695   : > { %p2072_p10 = por %p2071_p13, %p2070_p1 }
 0x697   : > { %p2073_p11 = pnand %p2072_p10, %p2066_p12 }
 0x699   : > { %2076 = shalt.err (!%p2073_p11)
}
 0x69a   : > { %1866 = dma.vmem_to_hbm [thread:$0]  (%p2599_p8), %s1508_s14, 64, %s2506_s25, %s1490_s15   ;;  %v1720_v25 = vld [vmem:[%s2569_s9] ss:$0 sm:$0xff]  ;;  %vm1468_vm6 = vcmask 257024  }
 0x69b   : > { %v1721_v27 = vld [vmem:[%s2570_s10] ss:$0 sm:$0xff]  ;;  %s2600_s14 = sld [smem:[#allocation18_spill]] }
 0x6a1   : > { %s570_s25 = scalar_lea.vmem %s2600_s14, %s1692_s17 }
 0x71a   : > { %v1448_v3 = vpop.xlane.xlu1 %1447 }
 0x71b   : > { %v1449_v5 = vmul.f32 0.03125, %v1448_v3 }
 0x71d   : > { %v1450_v23 = vadd.f32 1e-05, %v1449_v5 }
 0x71f   : > { %1991 = vrsqrt.f32 %v1450_v23 }
 0x729   : > { %v1992_v24 = vpop.eup %1991 }
 0x72a   : > { %v1452_v26 = vmul.f32 %v1992_v24, %v1444_v20 }
 0x72c   : > { %v1459_v28 = vmul.f32 %v1720_v25, %v1452_v26 }
 0x72e   : > { %v1466_v29 = vadd.f32 %v1721_v27, %v1459_v28 }
 0x730   : > { %v1467_v30 = vpack.c.bf16 %v1466_v29, %v1466_v29 }
 0x732   : > { %1469 = vst.msk [vmem:[%s570_s25] sm:$0xf] %vm1468_vm6, %v1467_v30 }
 0x733 PF: > { %s2601_s15 = sld [smem:[#allocation14_spill]]  ;;  %s2602_s21 = sld [smem:[#allocation11_spill]] }
 0x734   : > { %s2603_s24 = sld [smem:[#allocation16_spill]] }
 0x739   : > { %p1883_p8 = scmp.ge.s32.totalorder %s2601_s15, 2  ;;  %s1529_s30 = sand.u32 1, %s2602_s21  }
 0x73a   : > { %p2604_p2 = scmp.ne.s32.totalorder %s2603_s24, 0  ;;  %s1530_s20 = scalar_lea.sflag [#allocation4], %s1529_s30 }
 0x73c   : > { %p1876_p3 = pnand %p1883_p8, %p2604_p2 }
 0x73e   : > { %2110 = dma.done.wait (!%p1876_p3), %s1530_s20, 64  }
 0x73f   : > { %2112 = vsyncadd (!%p1876_p3), %s1530_s20, 4294967232  ;;  %s28_s26 = sadd.s32 1, %s2601_s15   ;;  %s2605_s11 = sld [smem:[#allocation12_spill]] }
 0x740   : > { %p25_p5 = scmp.ge.s32.totalorder %s28_s26, 4   ;;  %s2606_s23 = sld [smem:[#allocation17_spill]] }
 0x741   : > { %s2607_s24 = sld [smem:[#allocation13_spill]]  ;;  %s2608_s25 = sld [smem:[#allocation15_spill]] }
 0x742   : > { %s2609_s21 = smov %s2119_s22  ;;  %27 = sbr.rel (!%p25_p5) target bundleno = 8 (0x8), region = 132 }
 0x745   : > { %s2610_s22 = smov %s2605_s11 }
 0x749   :  { %1535 = vsyncpa [#allocation3], 1 }
 0x74a   :  { %1537 = vsyncpa [#allocation3 + $0x1], 1 }
 0x74b   :  { %1538 = vsyncpa [#allocation6], 1 }
 0x74c   :  { %1539 = vsyncpa [#allocation4], 1 }
 0x74d   :  { %1541 = vsyncpa [#allocation4 + $0x1], 1 }

</bundles_post_ra>
